<compile_context>
chip_gen: v7x
topology: tpu7x:2x2x1
jax: 0.10.0
libtpu: 0.0.40
codegen_flags: <defaults>
</compile_context>

<pallas_src>
from functools import partial

import jax
import jax.numpy as jnp
from jax import lax
from jax.experimental import pallas as pl
from jax.experimental.pallas import tpu as pltpu

_BN_EPS = 1e-5
_VMEM_LIMIT = 32 * 1024 * 1024


# --------------------------------------------------------------------------------------
# in-kernel helpers
# --------------------------------------------------------------------------------------
def _conv3x3_fused(x3d, m_ref):
    """3x3 circular conv as ONE MXU matmul (ky taps stacked along the lane/K axis).

    x3d:   (TB, H, W*Cin)      activations, channels fused into the lane axis.
    m_ref: (3*W*Cin, W*Cout)   block-circulant weights (kx taps + circular W-wrap folded
                               in, the 3 ky taps stacked along K).
    Returns (TB*H, W*Cout) float32 (raw conv output, no bias).
    """
    tb, hh, wcin = x3d.shape
    # Circular row shift along H (per image).
    # TODO(synk): pltpu.roll(x3d, +-1, axis=1) would do these shifts in the XLU slot,
    # but sublane rotation of packed (bf16) tiles is not reliably lowered -> concat.
    prev = jnp.concatenate([x3d[:, -1:, :], x3d[:, :-1, :]], axis=1)   # row h -> x[h-1]
    nxt = jnp.concatenate([x3d[:, 1:, :], x3d[:, :1, :]], axis=1)      # row h -> x[h+1]
    xs = jnp.concatenate([prev, x3d, nxt], axis=-1).reshape(tb * hh, 3 * wcin)
    return jnp.dot(xs, m_ref[...], preferred_element_type=jnp.float32)


def _stats_lanes(acc_f32):
    """Lane-dense per-lane [sum; sum-of-squares] of a (rows, W*C) f32 tile -> (1,2,W*C)."""
    rsum = jnp.sum(acc_f32, axis=0, keepdims=True)
    rsq = jnp.sum(acc_f32 * acc_f32, axis=0, keepdims=True)
    wc = acc_f32.shape[-1]
    return jnp.concatenate([rsum, rsq], axis=0).reshape(1, 2, wc)


# --------------------------------------------------------------------------------------
# kernels
# --------------------------------------------------------------------------------------
def _conv_stats_kernel(x_ref, m_ref, y_ref, st_ref):
    """pass 1: y = conv3x3_circular(x); st = per-grid-step per-lane [sum, sumsq] of y."""
    tb, hh, _ = x_ref.shape
    wc = y_ref.shape[-1]
    acc = _conv3x3_fused(x_ref[...], m_ref)                      # (TB*H, W*C) f32
    y_ref[...] = acc.reshape(tb, hh, wc).astype(y_ref.dtype)
    st_ref[...] = _stats_lanes(acc)


def _bn_conv_stats_kernel(y1_ref, s_ref, t_ref, m_ref, y2_ref, st_ref):
    """pass 2: h = relu(y1*s + t); y2 = conv3x3_circular(h); st = [sum, sumsq] of y2."""
    # NOTE: stats are taken from the f32 conv accumulator while pass 3 normalizes the
    # bf16-rounded y2 reloaded from HBM -- a documented, within-tolerance mismatch.
    tb, hh, wc = y2_ref.shape
    h = jnp.maximum(y1_ref[...].astype(jnp.float32) * s_ref[...] + t_ref[...], 0.0)
    acc = _conv3x3_fused(h.astype(m_ref.dtype), m_ref)
    y2_ref[...] = acc.reshape(tb, hh, wc).astype(y2_ref.dtype)
    st_ref[...] = _stats_lanes(acc)


def _bn_pool_kernel(y2p_ref, s_ref, t_ref, selw_ref, o_ref):
    """pass 3: h = relu(y2*s + t); out = MaxPool2d(2)(h), pooling fused into writeback.

    y2p_ref is (TB, H/2, 2*W*C): consecutive H-row pairs packed along lanes (free
    wrapper-side reshape), so the row-pool is a lane-half max (no strided sublane
    access, no TB-dependent selectors).  The W-pool is one one-hot matmul whose output
    lanes hold [even-W pools | odd-W pools], followed by another lane-half max.
    """
    tb, hp, wc2 = y2p_ref.shape
    wc = wc2 // 2
    wpc = selw_ref.shape[-1] // 2
    h = jnp.maximum(y2p_ref[...].astype(jnp.float32) * s_ref[...] + t_ref[...], 0.0)
    ph = jnp.maximum(h[..., :wc], h[..., wc:])                   # row pool (TB, H/2, W*C)
    ph = ph.reshape(tb * hp, wc).astype(selw_ref.dtype)
    pc = jnp.dot(ph, selw_ref[...], preferred_element_type=jnp.float32)
    out = jnp.maximum(pc[:, :wpc], pc[:, wpc:])                  # (TB*H/2, (W/2)*C)
    # TODO(synk): pack two pooled rows into the lane axis for a 128-lane-dense store;
    # the current last dim ((W/2)*C = 64) uses masked stores on the (quarter-size) output.
    o_ref[...] = out.reshape(tb, hp, wpc).astype(o_ref.dtype)


# --------------------------------------------------------------------------------------
# wrapper-side constant builders (tiny, folded once per compile)
# --------------------------------------------------------------------------------------
def _row_circulant(w_hwio, W):
    """Fold kx taps + circular W-wrap into per-ky block-circulant matrices, stacked on K.

    w_hwio: (3, 3, Cin, Cout).  Returns (3*W*Cin, W*Cout) with the ky=0/1/2 blocks
    stacked so that  out_row[h] = [x[h-1] | x[h] | x[h+1]] @ m.
    """
    KH, KW, Cin, Cout = w_hwio.shape
    wi = jnp.arange(W)[:, None]
    wo = jnp.arange(W)[None, :]
    kx = (wi - wo + 1) % W                                   # valid tap iff < KW
    valid = (kx < KW)[None, :, :, None, None]
    taps = w_hwio[:, jnp.clip(kx, 0, KW - 1), :, :]          # (KH, W, W, Cin, Cout)
    taps = jnp.where(valid, taps, 0.0)
    m = jnp.transpose(taps, (0, 1, 3, 2, 4)).reshape(KH, W * Cin, W * Cout)
    return m.reshape(KH * W * Cin, W * Cout)


def _fold_bn(st_lanes, gamma, beta, count, W, reps):
    """Fold grid-summed lane-dense [sum; sumsq] + BN affine into one per-lane FMA."""
    C = gamma.shape[0]
    st = st_lanes.reshape(2, W, C).sum(axis=1)               # W -> C fold, (2, C)
    mean = st[0] / count
    var = jnp.maximum(st[1] / count - mean * mean, 0.0)      # biased var; guard cancellation
    # TODO(synk): for very large N*H*W a Welford-style merge of per-tile partials would
    # be numerically safer than single-pass sum/sumsq.
    scale = gamma * lax.rsqrt(var + _BN_EPS)
    shift = beta - mean * scale
    return (jnp.tile(scale, reps)[None, :].astype(jnp.float32),
            jnp.tile(shift, reps)[None, :].astype(jnp.float32))


# --------------------------------------------------------------------------------------
# forward
# --------------------------------------------------------------------------------------
@partial(jax.jit, static_argnames=("compute_dtype", "batch_tile"))
def cnn_block_forward(x_nchw, params, compute_dtype=jnp.bfloat16, batch_tile=128):
    N, Cin, H, W = x_nchw.shape
    Cout = params["w1"].shape[-1]
    assert H % 2 == 0 and W % 2 == 0 and H >= 3 and W >= 3   # MaxPool2d(2) / 3x3 circular
    hp, wp = H // 2, W // 2
    WCin, WC, WpC = W * Cin, W * Cout, wp * Cout
    f32 = jnp.float32
    itemsize = jnp.dtype(compute_dtype).itemsize

    # Batch tile: as large as possible (grid-step overhead, MXU M-fill), limited by
    # divisibility of N and a conservative pass-2 VMEM working-set estimate
    # (double-buffered in/out blocks + lane-stacked matmul operand + f32 accumulator).
    TB = max(1, min(batch_tile, N))
    per_tb = H * WC * (12 * itemsize + 8)
    while TB > 1 and (N % TB or per_tb * TB > 24 * 1024 * 1024):
        TB -= 1
    G = N // TB

    cparams = pltpu.CompilerParams(dimension_semantics=("parallel",),
                                   vmem_limit_bytes=_VMEM_LIMIT)

    # ---- constants built once per compile ---------------------------------------------
    m1 = _row_circulant(params["w1"], W).astype(compute_dtype)        # (3*W*Cin, W*Cout)
    m2 = _row_circulant(params["w2"], W).astype(compute_dtype)        # (3*W*Cout, W*Cout)
    c_idx, q_idx = jnp.arange(W)[:, None], jnp.arange(wp)[None, :]
    sel_we = jnp.kron((c_idx == 2 * q_idx).astype(f32), jnp.eye(Cout, dtype=f32))
    sel_wo = jnp.kron((c_idx == 2 * q_idx + 1).astype(f32), jnp.eye(Cout, dtype=f32))
    sel_w = jnp.concatenate([sel_we, sel_wo], axis=1).astype(compute_dtype)  # (WC, 2*WpC)

    # NCHW -> lane-dense (N, H, W*Cin).  Conv biases intentionally dropped in-kernel:
    # batch-stat BN mean subtraction cancels them exactly (proven by the f32 check).
    x = jnp.transpose(x_nchw, (0, 2, 3, 1)).reshape(N, H, WCin).astype(compute_dtype)

    # ---- pass 1: conv1 + BN1 partial statistics ----------------------------------------
    y1, st1 = pl.pallas_call(
        _conv_stats_kernel,
        grid=(G,),
        in_specs=[pl.BlockSpec((TB, H, WCin), lambda i: (i, 0, 0)),
                  pl.BlockSpec((3 * WCin, WC), lambda i: (0, 0))],
        out_specs=[pl.BlockSpec((TB, H, WC), lambda i: (i, 0, 0)),
                   pl.BlockSpec((1, 2, WC), lambda i: (i, 0, 0))],
        out_shape=[jax.ShapeDtypeStruct((N, H, WC), compute_dtype),
                   jax.ShapeDtypeStruct((G, 2, WC), jnp.float32)],
        compiler_params=cparams,
    )(x, m1)

    count = jnp.float32(N * H * W)
    s1, t1 = _fold_bn(st1.sum(axis=0), params["g1"], params["be1"], count, W, W)

    # ---- pass 2: BN1 + ReLU + conv2 + BN2 partial statistics ---------------------------
    y2, st2 = pl.pallas_call(
        _bn_conv_stats_kernel,
        grid=(G,),
        in_specs=[pl.BlockSpec((TB, H, WC), lambda i: (i, 0, 0)),
                  pl.BlockSpec((1, WC), lambda i: (0, 0)),
                  pl.BlockSpec((1, WC), lambda i: (0, 0)),
                  pl.BlockSpec((3 * WC, WC), lambda i: (0, 0))],
        out_specs=[pl.BlockSpec((TB, H, WC), lambda i: (i, 0, 0)),
                   pl.BlockSpec((1, 2, WC), lambda i: (i, 0, 0))],
        out_shape=[jax.ShapeDtypeStruct((N, H, WC), compute_dtype),
                   jax.ShapeDtypeStruct((G, 2, WC), jnp.float32)],
        compiler_params=cparams,
    )(y1, s1, t1, m2)

    s2, t2 = _fold_bn(st2.sum(axis=0), params["g2"], params["be2"], count, W, 2 * W)

    # ---- pass 3: BN2 + ReLU + fused MaxPool2d(2) ---------------------------------------
    # View y2 with consecutive row pairs packed along lanes (row-major -> free reshape).
    y2p = y2.reshape(N, hp, 2 * WC)
    out = pl.pallas_call(
        _bn_pool_kernel,
        grid=(G,),
        in_specs=[pl.BlockSpec((TB, hp, 2 * WC), lambda i: (i, 0, 0)),
                  pl.BlockSpec((1, 2 * WC), lambda i: (0, 0)),
                  pl.BlockSpec((1, 2 * WC), lambda i: (0, 0)),
                  pl.BlockSpec((WC, 2 * WpC), lambda i: (0, 0))],
        out_specs=pl.BlockSpec((TB, hp, WpC), lambda i: (i, 0, 0)),
        out_shape=jax.ShapeDtypeStruct((N, hp, WpC), compute_dtype),
        compiler_params=cparams,
    )(y2p, s2, t2, sel_w)

    # lane-dense (N, hp, wp*Cout) -> PyTorch NCHW f32
    return jnp.transpose(out.reshape(N, hp, wp, Cout), (0, 3, 1, 2)).astype(jnp.float32)


# --------------------------------------------------------------------------------------
# params + pure-JAX reference (PyTorch training-mode forward semantics)
# --------------------------------------------------------------------------------------
def init_params(key, in_ch, out_ch):
    ks = jax.random.split(key, 8)

    def xavier(k, cin, cout):  # nn.init.xavier_uniform_ on a (cout, cin, 3, 3) conv weight
        bound = (6.0 / (cin * 9 + cout * 9)) ** 0.5
        return jax.random.uniform(k, (3, 3, cin, cout), jnp.float32, -bound, bound)  # HWIO

    def conv_bias(k, cin, cout):  # PyTorch default conv bias init (used only by reference)
        bound = 1.0 / (cin * 9) ** 0.5
        return jax.random.uniform(k, (cout,), jnp.float32, -bound, bound)

    return dict(
        w1=xavier(ks[0], in_ch, out_ch),
        b1=conv_bias(ks[1], in_ch, out_ch),
        g1=jax.random.uniform(ks[2], (out_ch,), jnp.float32, 0.5, 1.5),
        be1=0.1 * jax.random.normal(ks[3], (out_ch,), jnp.float32),
        w2=xavier(ks[4], out_ch, out_ch),
        b2=conv_bias(ks[5], out_ch, out_ch),
        g2=jax.random.uniform(ks[6], (out_ch,), jnp.float32, 0.5, 1.5),
        be2=0.1 * jax.random.normal(ks[7], (out_ch,), jnp.float32),
    )


def ref_forward(x_nchw, params):
    """Pure-JAX reference of the module's forward pass (biases included)."""
    x = jnp.transpose(x_nchw, (0, 2, 3, 1)).astype(jnp.float32)

    def conv(a, w, b):
        ap = jnp.pad(a, ((0, 0), (1, 1), (1, 1), (0, 0)), mode="wrap")
        y = lax.conv_general_dilated(ap, w, (1, 1), "VALID",
                                     dimension_numbers=("NHWC", "HWIO", "NHWC"))
        return y + b

    def bn_relu(a, g, be):
        m = jnp.mean(a, axis=(0, 1, 2), keepdims=True)
        v = jnp.mean((a - m) ** 2, axis=(0, 1, 2), keepdims=True)
        return jnp.maximum((a - m) * lax.rsqrt(v + _BN_EPS) * g + be, 0.0)

    h = bn_relu(conv(x, params["w1"], params["b1"]), params["g1"], params["be1"])
    h = bn_relu(conv(h, params["w2"], params["b2"]), params["g2"], params["be2"])
    N, H, W, C = h.shape
    h = h.reshape(N, H // 2, 2, W // 2, 2, C).max(axis=(2, 4))
    return jnp.transpose(h, (0, 3, 1, 2))


if __name__ == "__main__":
    N, in_ch, out_ch, H, W = 2, 4, 16, 16, 16
    in_ch, out_ch = 4, 8
    key = jax.random.PRNGKey(0)
    k_x, k_p, k_x2 = jax.random.split(key, 3)
    x = jax.random.normal(k_x, (N, in_ch, H, W), jnp.float32)            # PyTorch NCHW input
    params = init_params(k_p, in_ch, out_ch)

    ref = jax.block_until_ready(ref_forward(x, params))

    # strict check with f32 matmuls (proves kernel logic + exact bias/BN cancellation)
    out_f32 = jax.block_until_ready(
        cnn_block_forward(x, params, compute_dtype=jnp.float32))
    assert out_f32.shape == (N, out_ch, H // 2, W // 2), out_f32.shape
    assert jnp.allclose(out_f32, ref, atol=1e-3, rtol=1e-3), \
        float(jnp.max(jnp.abs(out_f32 - ref)))

    # default bf16-MXU path (f32 accumulation); loose tolerance covers bf16 rounding
    out_bf16 = jax.block_until_ready(
        cnn_block_forward(x, params, compute_dtype=jnp.bfloat16))
    assert out_bf16.shape == (N, out_ch, H // 2, W // 2), out_bf16.shape
    assert jnp.allclose(out_bf16, ref, atol=1e-1, rtol=5e-2), \
        float(jnp.max(jnp.abs(out_bf16 - ref)))

    # multi-grid-step path: several batch tiles, per-step partial BN statistics
    x2 = jax.random.normal(k_x2, (8, in_ch, H, W), jnp.float32)
    ref2 = jax.block_until_ready(ref_forward(x2, params))
    out2 = jax.block_until_ready(
        cnn_block_forward(x2, params, compute_dtype=jnp.float32, batch_tile=2))
    assert jnp.allclose(out2, ref2, atol=1e-3, rtol=1e-3), \
        float(jnp.max(jnp.abs(out2 - ref2)))

    print("KERNEL_OK")
</pallas_src>

<mosaic_0001>
module attributes {stable_mosaic.version = 11 : i64} {
  func.func @_conv_stats_kernel(%arg0: i32, %arg1: memref<2x16x64xf32, #tpu.memory_space<vmem>>, %arg2: memref<192x128xf32, #tpu.memory_space<vmem>>, %arg3: memref<2x16x128xf32, #tpu.memory_space<vmem>>, %arg4: memref<1x2x128xf32, #tpu.memory_space<vmem>>) attributes {dimension_semantics = [#tpu.dimension_semantics<parallel>], iteration_bounds = array<i64: 1>, scalar_prefetch = 0 : i64, scratch_operands = 0 : i64, tpu.core_type = #tpu.core_type<tc>, window_params = [{transform_indices = @transform_0, window_bounds = array<i64: 2, 16, 64>}, {pipeline_mode = #tpu.pipeline_mode<synchronous>, transform_indices = @transform_1, window_bounds = array<i64: 192, 128>}, {transform_indices = @transform_2, window_bounds = array<i64: 2, 16, 128>}, {transform_indices = @transform_3, window_bounds = array<i64: 1, 2, 128>}]} {
    %c0 = arith.constant 0 : index
    %c0_0 = arith.constant 0 : index
    %c0_1 = arith.constant 0 : index
    %0 = vector.load %arg1[%c0, %c0_0, %c0_1] : memref<2x16x64xf32, #tpu.memory_space<vmem>>, vector<2x16x64xf32>
    %1 = vector.extract_strided_slice %0 {offsets = [0, 15, 0], sizes = [2, 1, 64], strides = [1, 1, 1]} : vector<2x16x64xf32> to vector<2x1x64xf32>
    %2 = vector.extract_strided_slice %0 {offsets = [0, 0, 0], sizes = [2, 15, 64], strides = [1, 1, 1]} : vector<2x16x64xf32> to vector<2x15x64xf32>
    %3 = tpu.concatenate %1, %2 in 1 : vector<2x1x64xf32>, vector<2x15x64xf32> -> vector<2x16x64xf32>
    %4 = vector.extract_strided_slice %0 {offsets = [0, 1, 0], sizes = [2, 15, 64], strides = [1, 1, 1]} : vector<2x16x64xf32> to vector<2x15x64xf32>
    %5 = vector.extract_strided_slice %0 {offsets = [0, 0, 0], sizes = [2, 1, 64], strides = [1, 1, 1]} : vector<2x16x64xf32> to vector<2x1x64xf32>
    %6 = tpu.concatenate %4, %5 in 1 : vector<2x15x64xf32>, vector<2x1x64xf32> -> vector<2x16x64xf32>
    %7 = tpu.concatenate %3, %0, %6 in 2 : vector<2x16x64xf32>, vector<2x16x64xf32>, vector<2x16x64xf32> -> vector<2x16x192xf32>
    %8 = vector.shape_cast %7 : vector<2x16x192xf32> to vector<32x192xf32>
    %c0_2 = arith.constant 0 : index
    %c0_3 = arith.constant 0 : index
    %9 = vector.load %arg2[%c0_2, %c0_3] : memref<192x128xf32, #tpu.memory_space<vmem>>, vector<192x128xf32>
    %cst = arith.constant dense<0.000000e+00> : vector<32x128xf32>
    %10 = tpu.matmul %8, %9, %cst {dimension_numbers = #tpu.dot_dimension_numbers<[1], [0], [0], [1], [0, 0, 1, 1], [], []>} : vector<32x192xf32>, vector<192x128xf32>, vector<32x128xf32> -> vector<32x128xf32>
    %11 = vector.shape_cast %10 : vector<32x128xf32> to vector<2x16x128xf32>
    %c0_4 = arith.constant 0 : index
    %c0_5 = arith.constant 0 : index
    %c0_6 = arith.constant 0 : index
    %12 = vector.load %arg3[%c0_4, %c0_5, %c0_6] : memref<2x16x128xf32, #tpu.memory_space<vmem>>, vector<2x16x128xf32>
    tpu.vector_store %arg3[%c0_4, %c0_5, %c0_6], %11 {strides = array<i32>} : memref<2x16x128xf32, #tpu.memory_space<vmem>>, vector<2x16x128xf32>,
    %cst_7 = arith.constant dense<0.000000e+00> : vector<128xf32>
    %13 = vector.multi_reduction <add>, %10, %cst_7 [0] : vector<32x128xf32> to vector<128xf32>
    %14 = vector.shape_cast %13 : vector<128xf32> to vector<1x128xf32>
    %15 = arith.mulf %10, %10 : vector<32x128xf32>
    %cst_8 = arith.constant dense<0.000000e+00> : vector<128xf32>
    %16 = vector.multi_reduction <add>, %15, %cst_8 [0] : vector<32x128xf32> to vector<128xf32>
    %17 = vector.shape_cast %16 : vector<128xf32> to vector<1x128xf32>
    %18 = tpu.concatenate %14, %17 in 0 : vector<1x128xf32>, vector<1x128xf32> -> vector<2x128xf32>
    %19 = vector.shape_cast %18 : vector<2x128xf32> to vector<1x2x128xf32>
    %c0_9 = arith.constant 0 : index
    %c0_10 = arith.constant 0 : index
    %c0_11 = arith.constant 0 : index
    %20 = vector.load %arg4[%c0_9, %c0_10, %c0_11] : memref<1x2x128xf32, #tpu.memory_space<vmem>>, vector<1x2x128xf32>
    tpu.vector_store %arg4[%c0_9, %c0_10, %c0_11], %19 {strides = array<i32>} : memref<1x2x128xf32, #tpu.memory_space<vmem>>, vector<1x2x128xf32>,
    return
  }
  func.func @transform_0(%arg0: i32) -> (i32, i32, i32) {
    %c0_i32 = arith.constant 0 : i32
    %c0_i32_0 = arith.constant 0 : i32
    %c0_i32_1 = arith.constant 0 : i32
    return %arg0, %c0_i32, %c0_i32_0 : i32, i32, i32
  }
  func.func @transform_1(%arg0: i32) -> (i32, i32) {
    %c0_i32 = arith.constant 0 : i32
    %c0_i32_0 = arith.constant 0 : i32
    %c0_i32_1 = arith.constant 0 : i32
    return %c0_i32, %c0_i32_0 : i32, i32
  }
  func.func @transform_2(%arg0: i32) -> (i32, i32, i32) {
    %c0_i32 = arith.constant 0 : i32
    %c0_i32_0 = arith.constant 0 : i32
    %c0_i32_1 = arith.constant 0 : i32
    return %arg0, %c0_i32, %c0_i32_0 : i32, i32, i32
  }
  func.func @transform_3(%arg0: i32) -> (i32, i32, i32) {
    %c0_i32 = arith.constant 0 : i32
    %c0_i32_0 = arith.constant 0 : i32
    %c0_i32_1 = arith.constant 0 : i32
    return %arg0, %c0_i32, %c0_i32_0 : i32, i32, i32
  }
}

module attributes {stable_mosaic.version = 11 : i64} {
  func.func @_bn_conv_stats_kernel(%arg0: i32, %arg1: memref<2x16x128xf32, #tpu.memory_space<vmem>>, %arg2: memref<1x128xf32, #tpu.memory_space<vmem>>, %arg3: memref<1x128xf32, #tpu.memory_space<vmem>>, %arg4: memref<384x128xf32, #tpu.memory_space<vmem>>, %arg5: memref<2x16x128xf32, #tpu.memory_space<vmem>>, %arg6: memref<1x2x128xf32, #tpu.memory_space<vmem>>) attributes {dimension_semantics = [#tpu.dimension_semantics<parallel>], iteration_bounds = array<i64: 1>, scalar_prefetch = 0 : i64, scratch_operands = 0 : i64, tpu.core_type = #tpu.core_type<tc>, window_params = [{transform_indices = @transform_0, window_bounds = array<i64: 2, 16, 128>}, {pipeline_mode = #tpu.pipeline_mode<synchronous>, transform_indices = @transform_1, window_bounds = array<i64: 1, 128>}, {pipeline_mode = #tpu.pipeline_mode<synchronous>, transform_indices = @transform_2, window_bounds = array<i64: 1, 128>}, {pipeline_mode = #tpu.pipeline_mode<synchronous>, transform_indices = @transform_3, window_bounds = array<i64: 384, 128>}, {transform_indices = @transform_4, window_bounds = array<i64: 2, 16, 128>}, {transform_indices = @transform_5, window_bounds = array<i64: 1, 2, 128>}]} {
    %c0 = arith.constant 0 : index
    %c0_0 = arith.constant 0 : index
    %c0_1 = arith.constant 0 : index
    %0 = vector.load %arg1[%c0, %c0_0, %c0_1] : memref<2x16x128xf32, #tpu.memory_space<vmem>>, vector<2x16x128xf32>
    %c0_2 = arith.constant 0 : index
    %c0_3 = arith.constant 0 : index
    %1 = vector.load %arg2[%c0_2, %c0_3] : memref<1x128xf32, #tpu.memory_space<vmem>>, vector<1x128xf32>
    %2 = vector.shape_cast %1 : vector<1x128xf32> to vector<1x1x128xf32>
    %3 = vector.broadcast %2 : vector<1x1x128xf32> to vector<2x16x128xf32>
    %4 = arith.mulf %0, %3 : vector<2x16x128xf32>
    %c0_4 = arith.constant 0 : index
    %c0_5 = arith.constant 0 : index
    %5 = vector.load %arg3[%c0_4, %c0_5] : memref<1x128xf32, #tpu.memory_space<vmem>>, vector<1x128xf32>
    %6 = vector.shape_cast %5 : vector<1x128xf32> to vector<1x1x128xf32>
    %7 = vector.broadcast %6 : vector<1x1x128xf32> to vector<2x16x128xf32>
    %8 = arith.addf %4, %7 : vector<2x16x128xf32>
    %cst = arith.constant 0.000000e+00 : f32
    %9 = vector.broadcast %cst : f32 to vector<2x16x128xf32>
    %10 = arith.maximumf %8, %9 : vector<2x16x128xf32>
    %11 = vector.extract_strided_slice %10 {offsets = [0, 15, 0], sizes = [2, 1, 128], strides = [1, 1, 1]} : vector<2x16x128xf32> to vector<2x1x128xf32>
    %12 = vector.extract_strided_slice %10 {offsets = [0, 0, 0], sizes = [2, 15, 128], strides = [1, 1, 1]} : vector<2x16x128xf32> to vector<2x15x128xf32>
    %13 = tpu.concatenate %11, %12 in 1 : vector<2x1x128xf32>, vector<2x15x128xf32> -> vector<2x16x128xf32>
    %14 = vector.extract_strided_slice %10 {offsets = [0, 1, 0], sizes = [2, 15, 128], strides = [1, 1, 1]} : vector<2x16x128xf32> to vector<2x15x128xf32>
    %15 = vector.extract_strided_slice %10 {offsets = [0, 0, 0], sizes = [2, 1, 128], strides = [1, 1, 1]} : vector<2x16x128xf32> to vector<2x1x128xf32>
    %16 = tpu.concatenate %14, %15 in 1 : vector<2x15x128xf32>, vector<2x1x128xf32> -> vector<2x16x128xf32>
    %17 = tpu.concatenate %13, %10, %16 in 2 : vector<2x16x128xf32>, vector<2x16x128xf32>, vector<2x16x128xf32> -> vector<2x16x384xf32>
    %18 = vector.shape_cast %17 : vector<2x16x384xf32> to vector<32x384xf32>
    %c0_6 = arith.constant 0 : index
    %c0_7 = arith.constant 0 : index
    %19 = vector.load %arg4[%c0_6, %c0_7] : memref<384x128xf32, #tpu.memory_space<vmem>>, vector<384x128xf32>
    %cst_8 = arith.constant dense<0.000000e+00> : vector<32x128xf32>
    %20 = tpu.matmul %18, %19, %cst_8 {dimension_numbers = #tpu.dot_dimension_numbers<[1], [0], [0], [1], [0, 0, 1, 1], [], []>} : vector<32x384xf32>, vector<384x128xf32>, vector<32x128xf32> -> vector<32x128xf32>
    %21 = vector.shape_cast %20 : vector<32x128xf32> to vector<2x16x128xf32>
    %c0_9 = arith.constant 0 : index
    %c0_10 = arith.constant 0 : index
    %c0_11 = arith.constant 0 : index
    %22 = vector.load %arg5[%c0_9, %c0_10, %c0_11] : memref<2x16x128xf32, #tpu.memory_space<vmem>>, vector<2x16x128xf32>
    tpu.vector_store %arg5[%c0_9, %c0_10, %c0_11], %21 {strides = array<i32>} : memref<2x16x128xf32, #tpu.memory_space<vmem>>, vector<2x16x128xf32>,
    %cst_12 = arith.constant dense<0.000000e+00> : vector<128xf32>
    %23 = vector.multi_reduction <add>, %20, %cst_12 [0] : vector<32x128xf32> to vector<128xf32>
    %24 = vector.shape_cast %23 : vector<128xf32> to vector<1x128xf32>
    %25 = arith.mulf %20, %20 : vector<32x128xf32>
    %cst_13 = arith.constant dense<0.000000e+00> : vector<128xf32>
    %26 = vector.multi_reduction <add>, %25, %cst_13 [0] : vector<32x128xf32> to vector<128xf32>
    %27 = vector.shape_cast %26 : vector<128xf32> to vector<1x128xf32>
    %28 = tpu.concatenate %24, %27 in 0 : vector<1x128xf32>, vector<1x128xf32> -> vector<2x128xf32>
    %29 = vector.shape_cast %28 : vector<2x128xf32> to vector<1x2x128xf32>
    %c0_14 = arith.constant 0 : index
    %c0_15 = arith.constant 0 : index
    %c0_16 = arith.constant 0 : index
    %30 = vector.load %arg6[%c0_14, %c0_15, %c0_16] : memref<1x2x128xf32, #tpu.memory_space<vmem>>, vector<1x2x128xf32>
    tpu.vector_store %arg6[%c0_14, %c0_15, %c0_16], %29 {strides = array<i32>} : memref<1x2x128xf32, #tpu.memory_space<vmem>>, vector<1x2x128xf32>,
    return
  }
  func.func @transform_0(%arg0: i32) -> (i32, i32, i32) {
    %c0_i32 = arith.constant 0 : i32
    %c0_i32_0 = arith.constant 0 : i32
    %c0_i32_1 = arith.constant 0 : i32
    return %arg0, %c0_i32, %c0_i32_0 : i32, i32, i32
  }
  func.func @transform_1(%arg0: i32) -> (i32, i32) {
    %c0_i32 = arith.constant 0 : i32
    %c0_i32_0 = arith.constant 0 : i32
    %c0_i32_1 = arith.constant 0 : i32
    return %c0_i32, %c0_i32_0 : i32, i32
  }
  func.func @transform_2(%arg0: i32) -> (i32, i32) {
    %c0_i32 = arith.constant 0 : i32
    %c0_i32_0 = arith.constant 0 : i32
    %c0_i32_1 = arith.constant 0 : i32
    return %c0_i32, %c0_i32_0 : i32, i32
  }
  func.func @transform_3(%arg0: i32) -> (i32, i32) {
    %c0_i32 = arith.constant 0 : i32
    %c0_i32_0 = arith.constant 0 : i32
    %c0_i32_1 = arith.constant 0 : i32
    return %c0_i32, %c0_i32_0 : i32, i32
  }
  func.func @transform_4(%arg0: i32) -> (i32, i32, i32) {
    %c0_i32 = arith.constant 0 : i32
    %c0_i32_0 = arith.constant 0 : i32
    %c0_i32_1 = arith.constant 0 : i32
    return %arg0, %c0_i32, %c0_i32_0 : i32, i32, i32
  }
  func.func @transform_5(%arg0: i32) -> (i32, i32, i32) {
    %c0_i32 = arith.constant 0 : i32
    %c0_i32_0 = arith.constant 0 : i32
    %c0_i32_1 = arith.constant 0 : i32
    return %arg0, %c0_i32, %c0_i32_0 : i32, i32, i32
  }
}

module attributes {stable_mosaic.version = 11 : i64} {
  func.func @_bn_pool_kernel(%arg0: i32, %arg1: memref<2x8x256xf32, #tpu.memory_space<vmem>>, %arg2: memref<1x256xf32, #tpu.memory_space<vmem>>, %arg3: memref<1x256xf32, #tpu.memory_space<vmem>>, %arg4: memref<128x128xf32, #tpu.memory_space<vmem>>, %arg5: memref<2x8x64xf32, #tpu.memory_space<vmem>>) attributes {dimension_semantics = [#tpu.dimension_semantics<parallel>], iteration_bounds = array<i64: 1>, scalar_prefetch = 0 : i64, scratch_operands = 0 : i64, tpu.core_type = #tpu.core_type<tc>, window_params = [{transform_indices = @transform_0, window_bounds = array<i64: 2, 8, 256>}, {pipeline_mode = #tpu.pipeline_mode<synchronous>, transform_indices = @transform_1, window_bounds = array<i64: 1, 256>}, {pipeline_mode = #tpu.pipeline_mode<synchronous>, transform_indices = @transform_2, window_bounds = array<i64: 1, 256>}, {pipeline_mode = #tpu.pipeline_mode<synchronous>, transform_indices = @transform_3, window_bounds = array<i64: 128, 128>}, {transform_indices = @transform_4, window_bounds = array<i64: 2, 8, 64>}]} {
    %c0 = arith.constant 0 : index
    %c0_0 = arith.constant 0 : index
    %c0_1 = arith.constant 0 : index
    %0 = vector.load %arg1[%c0, %c0_0, %c0_1] : memref<2x8x256xf32, #tpu.memory_space<vmem>>, vector<2x8x256xf32>
    %c0_2 = arith.constant 0 : index
    %c0_3 = arith.constant 0 : index
    %1 = vector.load %arg2[%c0_2, %c0_3] : memref<1x256xf32, #tpu.memory_space<vmem>>, vector<1x256xf32>
    %2 = vector.shape_cast %1 : vector<1x256xf32> to vector<1x1x256xf32>
    %3 = vector.broadcast %2 : vector<1x1x256xf32> to vector<2x8x256xf32>
    %4 = arith.mulf %0, %3 : vector<2x8x256xf32>
    %c0_4 = arith.constant 0 : index
    %c0_5 = arith.constant 0 : index
    %5 = vector.load %arg3[%c0_4, %c0_5] : memref<1x256xf32, #tpu.memory_space<vmem>>, vector<1x256xf32>
    %6 = vector.shape_cast %5 : vector<1x256xf32> to vector<1x1x256xf32>
    %7 = vector.broadcast %6 : vector<1x1x256xf32> to vector<2x8x256xf32>
    %8 = arith.addf %4, %7 : vector<2x8x256xf32>
    %cst = arith.constant 0.000000e+00 : f32
    %9 = vector.broadcast %cst : f32 to vector<2x8x256xf32>
    %10 = arith.maximumf %8, %9 : vector<2x8x256xf32>
    %11 = vector.extract_strided_slice %10 {offsets = [0, 0, 0], sizes = [2, 8, 128], strides = [1, 1, 1]} : vector<2x8x256xf32> to vector<2x8x128xf32>
    %12 = vector.extract_strided_slice %10 {offsets = [0, 0, 128], sizes = [2, 8, 128], strides = [1, 1, 1]} : vector<2x8x256xf32> to vector<2x8x128xf32>
    %13 = arith.maximumf %11, %12 : vector<2x8x128xf32>
    %14 = vector.shape_cast %13 : vector<2x8x128xf32> to vector<16x128xf32>
    %c0_6 = arith.constant 0 : index
    %c0_7 = arith.constant 0 : index
    %15 = vector.load %arg4[%c0_6, %c0_7] : memref<128x128xf32, #tpu.memory_space<vmem>>, vector<128x128xf32>
    %cst_8 = arith.constant dense<0.000000e+00> : vector<16x128xf32>
    %16 = tpu.matmul %14, %15, %cst_8 {dimension_numbers = #tpu.dot_dimension_numbers<[1], [0], [0], [1], [0, 0, 1, 1], [], []>} : vector<16x128xf32>, vector<128x128xf32>, vector<16x128xf32> -> vector<16x128xf32>
    %17 = vector.extract_strided_slice %16 {offsets = [0, 0], sizes = [16, 64], strides = [1, 1]} : vector<16x128xf32> to vector<16x64xf32>
    %18 = vector.extract_strided_slice %16 {offsets = [0, 64], sizes = [16, 64], strides = [1, 1]} : vector<16x128xf32> to vector<16x64xf32>
    %19 = arith.maximumf %17, %18 : vector<16x64xf32>
    %20 = vector.shape_cast %19 : vector<16x64xf32> to vector<2x8x64xf32>
    %c0_9 = arith.constant 0 : index
    %c0_10 = arith.constant 0 : index
    %c0_11 = arith.constant 0 : index
    %21 = vector.load %arg5[%c0_9, %c0_10, %c0_11] : memref<2x8x64xf32, #tpu.memory_space<vmem>>, vector<2x8x64xf32>
    tpu.vector_store %arg5[%c0_9, %c0_10, %c0_11], %20 {strides = array<i32>} : memref<2x8x64xf32, #tpu.memory_space<vmem>>, vector<2x8x64xf32>,
    return
  }
  func.func @transform_0(%arg0: i32) -> (i32, i32, i32) {
    %c0_i32 = arith.constant 0 : i32
    %c0_i32_0 = arith.constant 0 : i32
    %c0_i32_1 = arith.constant 0 : i32
    return %arg0, %c0_i32, %c0_i32_0 : i32, i32, i32
  }
  func.func @transform_1(%arg0: i32) -> (i32, i32) {
    %c0_i32 = arith.constant 0 : i32
    %c0_i32_0 = arith.constant 0 : i32
    %c0_i32_1 = arith.constant 0 : i32
    return %c0_i32, %c0_i32_0 : i32, i32
  }
  func.func @transform_2(%arg0: i32) -> (i32, i32) {
    %c0_i32 = arith.constant 0 : i32
    %c0_i32_0 = arith.constant 0 : i32
    %c0_i32_1 = arith.constant 0 : i32
    return %c0_i32, %c0_i32_0 : i32, i32
  }
  func.func @transform_3(%arg0: i32) -> (i32, i32) {
    %c0_i32 = arith.constant 0 : i32
    %c0_i32_0 = arith.constant 0 : i32
    %c0_i32_1 = arith.constant 0 : i32
    return %c0_i32, %c0_i32_0 : i32, i32
  }
  func.func @transform_4(%arg0: i32) -> (i32, i32, i32) {
    %c0_i32 = arith.constant 0 : i32
    %c0_i32_0 = arith.constant 0 : i32
    %c0_i32_1 = arith.constant 0 : i32
    return %arg0, %c0_i32, %c0_i32_0 : i32, i32, i32
  }
}

</mosaic_0001>

<bundles_post_ra>
// kernel: cnn_block_forward.3
= control target key start
LH: loop header
LB: loop body
LE: loop exit
PB: predicated region body
PF: predicated region fallthrough
CT: control target
= control target key end

     0   :  { %v292_v3 = vmov 0.0|0.0   ;;  %vm36_vm0 = vcmask 1046528   ;;  %vm25_vm1 = vcmask 1040384   ;;  %s293_s18 = smov 64   ;;  %vm61_vm2 = vcmask 523264   ;;  %s472_s0 = inlined_call_operand.vmem [shape: f32[2,16,64], index: 0, kind: input, shape index: {}]   ;;  %s473_s1 = inlined_call_operand.vmem [shape: f32[192,128], index: 1, kind: input, shape index: {}]   ;;  %s474_s2 = inlined_call_operand.vmem [shape: f32[2,16,128], index: 2, kind: output, shape index: {0}]   ;;  %s475_s3 = inlined_call_operand.vmem [shape: f32[1,2,128], index: 3, kind: output, shape index: {1}]  }
   0x1   :  { %v13_v0 = vld [vmem:[%s472_s0] sm:$0xff]  ;;  %v14_v1 = vld [vmem:[%s472_s0 + $0x8] sm:$0xff]  ;;  %v15_v2 = vld [vmem:[%s472_s0 + $0x10] sm:$0xff]  ;;  %225 = vmatprep.subr.bf16.mxu0 %v292_v3  ;;  %261 = vmatprep.subr.bf16.mxu1 %v292_v3 }
   0x2   :  { %49 = vrot.lane.b32.xlu0 %v13_v0, %s293_s18  ;;  %v26_v4 = vrot.slane %v13_v0, 7  ;;  %v37_v5 = vrot.slane %v13_v0, 1  ;;  %v287_v6 = vpack.i.bf16 %v15_v2, %v14_v1  ;;  %v16_v7 = vld [vmem:[%s472_s0 + $0x18] sm:$0xff]  ;;  %v66_v8 = vld [vmem:[%s473_s1] sm:$0xff]  ;;  %v67_v9 = vld [vmem:[%s473_s1 + $0x8] sm:$0xff]  ;;  %v38_v10 = vrot.slane %v14_v1, 1 }
   0x3   :  { %55 = vrot.lane.b32.xlu1 %v16_v7, %s293_s18  ;;  %v20_v11 = vrot.slane %v16_v7, 7  ;;  %v41_v12 = vrot.slane %v16_v7, 1  ;;  %v226_v13 = vpack.c.bf16 %v67_v9, %v66_v8  ;;  %v68_v14 = vld [vmem:[%s473_s1 + $0x10] sm:$0xff]  ;;  %v69_v15 = vld [vmem:[%s473_s1 + $0x18] sm:$0xff]  ;;  %v19_v16 = vrot.slane %v14_v1, 7  ;;  %v70_v23 = vld [vmem:[%s473_s1 + $0x20] sm:$0xff] }
   0x4   :  { %v39_v17 = vsel %vm36_vm0, %v37_v5, %v38_v10  ;;  %v342_v18 = vsel %vm36_vm0, %v38_v10, %v37_v5  ;;  %v40_v19 = vrot.slane %v15_v2, 1  ;;  %v229_v20 = vpack.c.bf16 %v69_v15, %v68_v14  ;;  %v71_v24 = vld [vmem:[%s473_s1 + $0x28] sm:$0xff]  ;;  %v72_v31 = vld [vmem:[%s473_s1 + $0x30] sm:$0xff]  ;;  %v73_v32 = vld [vmem:[%s473_s1 + $0x38] sm:$0xff] }
   0x5   :  { %227 = vmatpush1.bf16.msra.mxu0 %v226_v13  ;;  %273 = vmatpush1.bf16.msra.mxu1 %v226_v13  ;;  %v345_v21 = vsel %vm25_vm1, %v19_v16, %v26_v4  ;;  %v28_v22 = vrot.slane %v15_v2, 7  ;;  %v356_v26 = vsel %vm25_vm1, %v26_v4, %v19_v16  ;;  %v232_v30 = vpack.c.bf16 %v71_v24, %v70_v23  ;;  %v74_v34 = vld [vmem:[%s473_s1 + $0x40] sm:$0xff]  ;;  %v75_v35 = vld [vmem:[%s473_s1 + $0x48] sm:$0xff]  ;;  %v76_v37 = vld [vmem:[%s473_s1 + $0x50] sm:$0xff] }
   0x6   :  { %288 = vrot.lane.b32.xlu0 %v287_v6, %s293_s18  ;;  %228 = vmatprep.subr.bf16.mxu0 %v292_v3  ;;  %v42_v25 = vsel %vm36_vm0, %v40_v19, %v41_v12  ;;  %v365_v28 = vsel %vm36_vm0, %v41_v12, %v40_v19  ;;  %v235_v33 = vpack.c.bf16 %v73_v32, %v72_v31  ;;  %v77_v38 = vld [vmem:[%s473_s1 + $0x58] sm:$0xff]  ;;  %v78_v40 = vld [vmem:[%s473_s1 + $0x60] sm:$0xff]  ;;  %v79_v41 = vld [vmem:[%s473_s1 + $0x68] sm:$0xff] }
   0x7   :  { %262 = vmatprep.subr.bf16.mxu1 %v292_v3  ;;  %221 = vmatprep.mubr.msk.f32.mxu0 %vm61_vm2, %v39_v17  ;;  %v361_v27 = vsel %vm25_vm1, %v20_v11, %v28_v22  ;;  %v368_v29 = vsel %vm25_vm1, %v28_v22, %v20_v11  ;;  %v238_v36 = vpack.c.bf16 %v75_v35, %v74_v34  ;;  %v80_v43 = vld [vmem:[%s473_s1 + $0x70] sm:$0xff]  ;;  %v81_v44 = vld [vmem:[%s473_s1 + $0x78] sm:$0xff]  ;;  %v82_v46 = vld [vmem:[%s473_s1 + $0x80] sm:$0xff] }
   0x8   :  { %223 = vmatprep.mubr.msk.f32.mxu1 %vm61_vm2, %v42_v25  ;;  %v241_v39 = vpack.c.bf16 %v77_v38, %v76_v37  ;;  %v244_v42 = vpack.c.bf16 %v79_v41, %v78_v40  ;;  %v247_v45 = vpack.c.bf16 %v81_v44, %v80_v43  ;;  %v83_v47 = vld [vmem:[%s473_s1 + $0x88] sm:$0xff]  ;;  %v84_v49 = vld [vmem:[%s473_s1 + $0x90] sm:$0xff]  ;;  %v85_v50 = vld [vmem:[%s473_s1 + $0x98] sm:$0xff] }
   0x9   :  { %230 = vmatpush1.bf16.msra.mxu0 %v229_v20  ;;  %274 = vmatpush1.bf16.msra.mxu1 %v229_v20  ;;  %v250_v48 = vpack.c.bf16 %v83_v47, %v82_v46  ;;  %v253_v51 = vpack.c.bf16 %v85_v50, %v84_v49  ;;  %v86_v52 = vld [vmem:[%s473_s1 + $0xa0] sm:$0xff]  ;;  %v87_v53 = vld [vmem:[%s473_s1 + $0xa8] sm:$0xff]  ;;  %v88_v55 = vld [vmem:[%s473_s1 + $0xb0] sm:$0xff] }
   0xa   :  { %231 = vmatprep.subr.bf16.mxu0 %v292_v3  ;;  %263 = vmatprep.subr.bf16.mxu1 %v292_v3  ;;  %v256_v54 = vpack.c.bf16 %v87_v53, %v86_v52  ;;  %v89_v56 = vld [vmem:[%s473_s1 + $0xb8] sm:$0xff] }
   0xb   :  { %v259_v57 = vpack.c.bf16 %v89_v56, %v88_v55 }
   0xd   :  { %233 = vmatpush1.bf16.msra.mxu0 %v232_v30  ;;  %275 = vmatpush1.bf16.msra.mxu1 %v232_v30 }
   0xe   :  { %234 = vmatprep.subr.bf16.mxu0 %v292_v3  ;;  %264 = vmatprep.subr.bf16.mxu1 %v292_v3 }
  0x11   :  { %236 = vmatpush1.bf16.msra.mxu0 %v235_v33  ;;  %276 = vmatpush1.bf16.msra.mxu1 %v235_v33 }
  0x12   :  { %237 = vmatprep.subr.bf16.mxu0 %v292_v3  ;;  %265 = vmatprep.subr.bf16.mxu1 %v292_v3 }
  0x15   :  { %239 = vmatpush1.bf16.msra.mxu0 %v238_v36  ;;  %277 = vmatpush1.bf16.msra.mxu1 %v238_v36 }
  0x16   :  { %240 = vmatprep.subr.bf16.mxu0 %v292_v3  ;;  %266 = vmatprep.subr.bf16.mxu1 %v292_v3 }
  0x19   :  { %242 = vmatpush1.bf16.msra.mxu0 %v241_v39  ;;  %278 = vmatpush1.bf16.msra.mxu1 %v241_v39 }
  0x1a   :  { %243 = vmatprep.subr.bf16.mxu0 %v292_v3  ;;  %267 = vmatprep.subr.bf16.mxu1 %v292_v3 }
  0x1d   :  { %245 = vmatpush1.bf16.msra.mxu0 %v244_v42  ;;  %279 = vmatpush1.bf16.msra.mxu1 %v244_v42 }
  0x1e   :  { %246 = vmatprep.subr.bf16.mxu0 %v292_v3  ;;  %268 = vmatprep.subr.bf16.mxu1 %v292_v3 }
  0x21   :  { %248 = vmatpush1.bf16.msra.mxu0 %v247_v45  ;;  %280 = vmatpush1.bf16.msra.mxu1 %v247_v45 }
  0x22   :  { %249 = vmatprep.subr.bf16.mxu0 %v292_v3  ;;  %269 = vmatprep.subr.bf16.mxu1 %v292_v3 }
  0x25   :  { %251 = vmatpush1.bf16.msra.mxu0 %v250_v48  ;;  %281 = vmatpush1.bf16.msra.mxu1 %v250_v48 }
  0x26   :  { %252 = vmatprep.subr.bf16.mxu0 %v292_v3  ;;  %270 = vmatprep.subr.bf16.mxu1 %v292_v3 }
  0x29   :  { %254 = vmatpush1.bf16.msra.mxu0 %v253_v51  ;;  %282 = vmatpush1.bf16.msra.mxu1 %v253_v51 }
  0x2a   :  { %255 = vmatprep.subr.bf16.mxu0 %v292_v3  ;;  %271 = vmatprep.subr.bf16.mxu1 %v292_v3 }
  0x2d   :  { %257 = vmatpush1.bf16.msra.mxu0 %v256_v54  ;;  %283 = vmatpush1.bf16.msra.mxu1 %v256_v54 }
  0x2e   :  { %258 = vmatprep.subr.bf16.mxu0 %v292_v3  ;;  %272 = vmatprep.subr.bf16.mxu1 %v292_v3 }
  0x31   :  { %260 = vmatpush1.bf16.msra.mxu0 %v259_v57  ;;  %284 = vmatpush1.bf16.msra.mxu1 %v259_v57 }
  0x74   :  { %v50_v58 = vpop.permute.xlu0 %49 }
  0x75   :  { %v62_v59 = vsel %vm61_vm2, %v345_v21, %v50_v58  ;;  %v56_v63 = vpop.permute.xlu1 %55 }
  0x76   :  { %165 = vmatmul.mubr.f32.vlgmr.msra.gmra.mrb[0].mxu0 %v62_v59  ;;  %v65_v2 = vsel %vm61_vm2, %v368_v29, %v56_v63 }
  0x77   :  { %222 = vmatprep.mubr.msk.f32.mxu0 %vm61_vm2, %v342_v18 }
  0x78   :  { %v289_v60 = vpop.permute.xlu0 %288 }
  0x79   :  { %v291_v61 = vunpack.i.h.bf16 %v289_v60  ;;  %v290_v62 = vunpack.i.l.bf16 %v289_v60 }
  0x7b   :  { %v63_v0 = vsel %vm61_vm2, %v356_v26, %v290_v62  ;;  %v64_v1 = vsel %vm61_vm2, %v361_v27, %v291_v61 }
  0x7c   :  { %170 = vmatmul.mubr.f32.gmra.mrb[2].mxu0 %v63_v0  ;;  %175 = vmatmul.mubr.f32.vlgmr.msra.gmra.mrb[0].mxu1 %v64_v1 }
  0x7d   :  { %224 = vmatprep.mubr.msk.f32.mxu1 %vm61_vm2, %v365_v28 }
  0x80   :  { %180 = vmatmul.mubr.f32.gmra.mrb[2].mxu1 %v65_v2 }
 0x149   :  { %v166_v3 = vpop.f32.mrb[0].mxu0 }
 0x14a   :  { %185 = vst [vmem:[%s474_s2] sm:$0xff] %v166_v3  ;;  %v168_v4 = vpop.f32.mrb[1].mxu0  ;;  %v198_v7 = vmul.f32 %v166_v3, %v166_v3 }
 0x14f   :  { %v171_v5 = vpop.f32.mrb[2].mxu0  ;;  %v176_v6 = vpop.f32.mrb[0].mxu1 }
 0x150   :  { %186 = vst [vmem:[%s474_s2 + $0x8] sm:$0xff] %v171_v5  ;;  %v189_v8 = vadd.f32 %v171_v5, %v166_v3  ;;  %v199_v9 = vmul.f32 %v171_v5, %v171_v5  ;;  %187 = vst [vmem:[%s474_s2 + $0x10] sm:$0xff] %v176_v6  ;;  %v173_v10 = vpop.f32.mrb[3].mxu0  ;;  %v178_v11 = vpop.f32.mrb[1].mxu1  ;;  %v200_v14 = vmul.f32 %v176_v6, %v176_v6 }
 0x152   :  { %v202_v12 = vadd.f32 %v199_v9, %v198_v7  ;;  %v190_v13 = vadd.f32 %v189_v8, %v176_v6 }
 0x153   :  { %v181_v15 = vpop.f32.mrb[2].mxu1 }
 0x154   :  { %v203_v16 = vadd.f32 %v202_v12, %v200_v14  ;;  %188 = vst [vmem:[%s474_s2 + $0x18] sm:$0xff] %v181_v15  ;;  %v191_v17 = vadd.f32 %v190_v13, %v181_v15  ;;  %v201_v18 = vmul.f32 %v181_v15, %v181_v15  ;;  %v183_v19 = vpop.f32.mrb[3].mxu1 }
 0x156   :  { %v192_v20 = vrot.slane %v191_v17, 4  ;;  %v204_v21 = vadd.f32 %v203_v16, %v201_v18 }
 0x158   :  { %v193_v22 = vadd.f32 %v192_v20, %v191_v17  ;;  %v205_v23 = vrot.slane %v204_v21, 4 }
 0x15a   :  { %v194_v24 = vrot.slane %v193_v22, 2  ;;  %v206_v25 = vadd.f32 %v205_v23, %v204_v21 }
 0x15c   :  { %v195_v26 = vadd.f32 %v194_v24, %v193_v22  ;;  %v207_v27 = vrot.slane %v206_v25, 2 }
 0x15e   :  { %v196_v28 = vrot.slane %v195_v26, 1  ;;  %v208_v29 = vadd.f32 %v207_v27, %v206_v25 }
 0x160   :  { %v209_v30 = vrot.slane %v208_v29, 1  ;;  %v197_v31 = vadd.f32 %v196_v28, %v195_v26 }
 0x162   :  { %v210_v32 = vadd.f32 %v209_v30, %v208_v29 }
 0x164   :  { %v211_v33 = vsel %vm25_vm1, %v197_v31, %v210_v32 }
 0x165   :  { %212 = vst [vmem:[%s475_s3] sm:$0x3] %v211_v33 }

// kernel: tile.23
= control target key start
LH: loop header
LB: loop body
LE: loop exit
PB: predicated region body
PF: predicated region fallthrough
CT: control target
= control target key end

     0   :  { %s28_s0 = inlined_call_operand.vmem [shape: f32[8], index: 0, kind: input, shape index: {}]   ;;  %s29_s1 = inlined_call_operand.vmem [shape: f32[16,8], index: 1, kind: output, shape index: {}]  }
   0x1   :  { %v4_v0 = vld [vmem:[%s28_s0] ss:$0 sm:$0xff] }
   0x2   :  { %5 = vst [vmem:[%s29_s1] sm:$0xff] %v4_v0  ;;  %8 = vst [vmem:[%s29_s1 + $0x8] sm:$0xff] %v4_v0 }

// kernel: tile.24
= control target key start
LH: loop header
LB: loop body
LE: loop exit
PB: predicated region body
PF: predicated region fallthrough
CT: control target
= control target key end

     0   :  { %s131_s10 = smov 120   ;;  %s132_s11 = smov 104   ;;  %vm3_vm0 = vcmask 64512   ;;  %vm9_vm1 = vcmask 1048512   ;;  %vm15_vm2 = vcmask 982912   ;;  %vm21_vm3 = vcmask 917312   ;;  %s207_s0 = inlined_call_operand.vmem [shape: f32[16,8], index: 0, kind: input, shape index: {}]   ;;  %s208_s1 = inlined_call_operand.vmem [shape: f32[1,128], index: 1, kind: output, shape index: {}]  }
   0x1   :  { %v101_v0 = vld [vmem:[%s207_s0 + $0xf] sm:$0x1]   ;;  %v103_v1 = vld [vmem:[%s207_s0 + $0xd] sm:$0x1]   ;;  %v102_v2 = vld [vmem:[%s207_s0 + $0xe] sm:$0x1]  }
   0x2   :  { %7 = vrot.lane.b32.xlu0 %v101_v0, %s131_s10  ;;  %19 = vrot.lane.b32.xlu1 %v103_v1, %s132_s11  ;;  %v104_v3 = vld [vmem:[%s207_s0 + $0xc] sm:$0x1]   ;;  %s133_s16 = smov 112   ;;  %s134_s17 = smov 96   ;;  %v105_v4 = vld [vmem:[%s207_s0 + $0xb] sm:$0x1]  }
   0x3   :  { %v106_v5 = vld [vmem:[%s207_s0 + $0xa] sm:$0x1]   ;;  %v2_v6 = vld [vmem:[%s207_s0] sm:$0x1]   ;;  %s135_s24 = smov 88   ;;  %s136_s25 = smov 80  }
   0x4   :  { %4 = vst.msk [vmem:[#allocation0] sm:$0x1] %vm3_vm0, %v2_v6   ;;  %v107_v7 = vld [vmem:[%s207_s0 + $0x9] sm:$0x1]   ;;  %v108_v8 = vld [vmem:[%s207_s0 + $0x8] sm:$0x1]  }
   0x5   :  { %s137_s30 = smov 72   ;;  %s138_s2 = smov 64   ;;  %v109_v9 = vld [vmem:[%s207_s0 + $0x7] sm:$0x1]   ;;  %v110_v10 = vld [vmem:[%s207_s0 + $0x6] sm:$0x1]  }
   0x6   :  { %13 = vrot.lane.b32.xlu0 %v102_v2, %s133_s16  ;;  %25 = vrot.lane.b32.xlu1 %v104_v3, %s134_s17  ;;  %s139_s7 = smov 56   ;;  %s140_s8 = smov 48   ;;  %v111_v11 = vld [vmem:[%s207_s0 + $0x5] sm:$0x1]   ;;  %v112_v12 = vld [vmem:[%s207_s0 + $0x4] sm:$0x1]  }
   0x7   :  { %s141_s13 = smov 40   ;;  %s142_s14 = smov 32   ;;  %v113_v13 = vld [vmem:[%s207_s0 + $0x3] sm:$0x1]   ;;  %v114_v14 = vld [vmem:[%s207_s0 + $0x2] sm:$0x1]  }
   0x8   :  { %s143_s19 = smov 24   ;;  %s144_s20 = smov 16   ;;  %v115_v15 = vld [vmem:[%s207_s0 + $0x1] sm:$0x1]   ;;  %vm27_vm4 = vcmask 851712   ;;  %vm33_vm5 = vcmask 786112  }
   0x9   :  { %s145_s0 = smov 8   ;;  %vm39_vm6 = vcmask 720512   ;;  %vm45_vm7 = vcmask 654912   ;;  %vm51_vm8 = vcmask 589312   ;;  %vm57_vm9 = vcmask 523712  }
   0xa   :  { %31 = vrot.lane.b32.xlu0 %v105_v4, %s135_s24  ;;  %37 = vrot.lane.b32.xlu1 %v106_v5, %s136_s25  ;;  %vm63_vm10 = vcmask 458112   ;;  %vm69_vm11 = vcmask 392512   ;;  %vm75_vm12 = vcmask 326912   ;;  %vm81_vm13 = vcmask 261312  }
   0xb   :  { %vm87_vm14 = vcmask 195712   ;;  %vm93_vm15 = vcmask 130112  }
   0xe   :  { %43 = vrot.lane.b32.xlu0 %v107_v7, %s137_s30  ;;  %49 = vrot.lane.b32.xlu1 %v108_v8, %s138_s2 }
  0x12   :  { %55 = vrot.lane.b32.xlu0 %v109_v9, %s139_s7  ;;  %61 = vrot.lane.b32.xlu1 %v110_v10, %s140_s8 }
  0x16   :  { %67 = vrot.lane.b32.xlu0 %v111_v11, %s141_s13  ;;  %73 = vrot.lane.b32.xlu1 %v112_v12, %s142_s14 }
  0x1a   :  { %79 = vrot.lane.b32.xlu0 %v113_v13, %s143_s19  ;;  %85 = vrot.lane.b32.xlu1 %v114_v14, %s144_s20 }
  0x1e   :  { %91 = vrot.lane.b32.xlu0 %v115_v15, %s145_s0 }
  0x74   :  { %v8_v16 = vpop.permute.xlu0 %7   ;;  %v20_v17 = vpop.permute.xlu1 %19  }
  0x75   :  { %10 = vst.msk [vmem:[#allocation0] sm:$0x1] %vm9_vm1, %v8_v16  }
  0x78   :  { %v14_v18 = vpop.permute.xlu0 %13   ;;  %v26_v19 = vpop.permute.xlu1 %25  }
  0x79   :  { %16 = vst.msk [vmem:[#allocation0] sm:$0x1] %vm15_vm2, %v14_v18  }
  0x7a   :  { %22 = vst.msk [vmem:[#allocation0] sm:$0x1] %vm21_vm3, %v20_v17  }
  0x7b   :  { %28 = vst.msk [vmem:[#allocation0] sm:$0x1] %vm27_vm4, %v26_v19  }
  0x7c   :  { %v32_v20 = vpop.permute.xlu0 %31   ;;  %v38_v21 = vpop.permute.xlu1 %37  }
  0x7d   :  { %34 = vst.msk [vmem:[#allocation0] sm:$0x1] %vm33_vm5, %v32_v20  }
  0x7e   :  { %40 = vst.msk [vmem:[#allocation0] sm:$0x1] %vm39_vm6, %v38_v21  }
  0x80   :  { %v44_v22 = vpop.permute.xlu0 %43   ;;  %v50_v23 = vpop.permute.xlu1 %49  }
  0x81   :  { %46 = vst.msk [vmem:[#allocation0] sm:$0x1] %vm45_vm7, %v44_v22  }
  0x82   :  { %52 = vst.msk [vmem:[#allocation0] sm:$0x1] %vm51_vm8, %v50_v23  }
  0x84   :  { %v56_v24 = vpop.permute.xlu0 %55   ;;  %v62_v25 = vpop.permute.xlu1 %61  }
  0x85   :  { %58 = vst.msk [vmem:[#allocation0] sm:$0x1] %vm57_vm9, %v56_v24  }
  0x86   :  { %64 = vst.msk [vmem:[#allocation0] sm:$0x1] %vm63_vm10, %v62_v25  }
  0x88   :  { %v68_v26 = vpop.permute.xlu0 %67   ;;  %v74_v27 = vpop.permute.xlu1 %73  }
  0x89   :  { %70 = vst.msk [vmem:[#allocation0] sm:$0x1] %vm69_vm11, %v68_v26  }
  0x8a   :  { %76 = vst.msk [vmem:[#allocation0] sm:$0x1] %vm75_vm12, %v74_v27  }
  0x8c   :  { %v80_v28 = vpop.permute.xlu0 %79   ;;  %v86_v29 = vpop.permute.xlu1 %85  }
  0x8d   :  { %82 = vst.msk [vmem:[#allocation0] sm:$0x1] %vm81_vm13, %v80_v28  }
  0x8e   :  { %88 = vst.msk [vmem:[#allocation0] sm:$0x1] %vm87_vm14, %v86_v29  }
  0x90   :  { %v92_v30 = vpop.permute.xlu0 %91  }
  0x91   :  { %94 = vst.msk [vmem:[#allocation0] sm:$0x1] %vm93_vm15, %v92_v30  }
  0x98   :  { %v98_v31 = vld [vmem:[#allocation0] sm:$0x1] }
  0x99   :  { %100 = vst [vmem:[%s208_s1] sm:$0x1] %v98_v31 }

// kernel: cnn_block_forward.4
= control target key start
LH: loop header
LB: loop body
LE: loop exit
PB: predicated region body
PF: predicated region fallthrough
CT: control target
= control target key end

     0   :  { %vm68_vm0 = vcmask 1046528   ;;  %vm57_vm1 = vcmask 1040384   ;;  %s721_s3 = inlined_call_operand.vmem [shape: f32[384,128], index: 3, kind: input, shape index: {}]   ;;  %s722_s0 = inlined_call_operand.vmem [shape: f32[2,16,128], index: 0, kind: input, shape index: {}]   ;;  %s723_s1 = inlined_call_operand.vmem [shape: f32[1,128], index: 1, kind: input, shape index: {}]   ;;  %s724_s2 = inlined_call_operand.vmem [shape: f32[1,128], index: 2, kind: input, shape index: {}]   ;;  %s725_s4 = inlined_call_operand.vmem [shape: f32[2,16,128], index: 4, kind: output, shape index: {0}]   ;;  %s726_s5 = inlined_call_operand.vmem [shape: f32[1,2,128], index: 5, kind: output, shape index: {1}]  }
   0x1   :  { %v99_v0 = vld [vmem:[%s721_s3 + $0x80] sm:$0xff]  ;;  %v100_v1 = vld [vmem:[%s721_s3 + $0x88] sm:$0xff]  ;;  %v101_v9 = vld [vmem:[%s721_s3 + $0x90] sm:$0xff] }
   0x2   :  { %v83_v2 = vld [vmem:[%s721_s3] sm:$0xff]  ;;  %v441_v3 = vpack.c.bf16 %v100_v1, %v99_v0  ;;  %v84_v4 = vld [vmem:[%s721_s3 + $0x8] sm:$0xff]  ;;  %v102_v10 = vld [vmem:[%s721_s3 + $0x98] sm:$0xff] }
   0x3   :  { %v115_v5 = vld [vmem:[%s721_s3 + $0x100] sm:$0xff]  ;;  %v116_v6 = vld [vmem:[%s721_s3 + $0x108] sm:$0xff]  ;;  %v443_v7 = vpack.c.bf16 %v84_v4, %v83_v2  ;;  %v85_v11 = vld [vmem:[%s721_s3 + $0x10] sm:$0xff]  ;;  %v445_v12 = vpack.c.bf16 %v102_v10, %v101_v9 }
   0x4   :  { %v473_v8 = vpack.c.bf16 %v116_v6, %v115_v5  ;;  %442 = vmatprep.subr.bf16.mxu0 %v441_v3  ;;  %v86_v13 = vld [vmem:[%s721_s3 + $0x18] sm:$0xff]  ;;  %v117_v14 = vld [vmem:[%s721_s3 + $0x110] sm:$0xff]  ;;  %v103_v18 = vld [vmem:[%s721_s3 + $0xa0] sm:$0xff] }
   0x5   :  { %v118_v15 = vld [vmem:[%s721_s3 + $0x118] sm:$0xff]  ;;  %444 = vmatpush3.bf16.msra.mxu0 %v443_v7  ;;  %v447_v16 = vpack.c.bf16 %v86_v13, %v85_v11  ;;  %v104_v19 = vld [vmem:[%s721_s3 + $0xa8] sm:$0xff]  ;;  %v87_v20 = vld [vmem:[%s721_s3 + $0x20] sm:$0xff] }
   0x6   :  { %474 = vmatprep.subr.bf16.mxu1 %v473_v8  ;;  %v477_v17 = vpack.c.bf16 %v118_v15, %v117_v14  ;;  %446 = vmatprep.subr.bf16.mxu0 %v445_v12  ;;  %v449_v21 = vpack.c.bf16 %v104_v19, %v103_v18  ;;  %v88_v22 = vld [vmem:[%s721_s3 + $0x28] sm:$0xff]  ;;  %v119_v23 = vld [vmem:[%s721_s3 + $0x120] sm:$0xff]  ;;  %v105_v26 = vld [vmem:[%s721_s3 + $0xb0] sm:$0xff] }
   0x7   :  { %476 = vmatpush3.bf16.msra.mxu1 %v473_v8  ;;  %v120_v24 = vld [vmem:[%s721_s3 + $0x128] sm:$0xff]  ;;  %v106_v27 = vld [vmem:[%s721_s3 + $0xb8] sm:$0xff]  ;;  %v121_v28 = vld [vmem:[%s721_s3 + $0x130] sm:$0xff]  ;;  %v451_v30 = vpack.c.bf16 %v88_v22, %v87_v20 }
   0x8   :  { %478 = vmatprep.subr.bf16.mxu1 %v477_v17  ;;  %v481_v25 = vpack.c.bf16 %v120_v24, %v119_v23  ;;  %v122_v29 = vld [vmem:[%s721_s3 + $0x138] sm:$0xff]  ;;  %v453_v31 = vpack.c.bf16 %v106_v27, %v105_v26  ;;  %v89_v32 = vld [vmem:[%s721_s3 + $0x30] sm:$0xff]  ;;  %v107_v35 = vld [vmem:[%s721_s3 + $0xc0] sm:$0xff] }
   0x9   :  { %448 = vmatpush3.bf16.msra.mxu0 %v447_v16  ;;  %v90_v33 = vld [vmem:[%s721_s3 + $0x38] sm:$0xff]  ;;  %v485_v34 = vpack.c.bf16 %v122_v29, %v121_v28  ;;  %v108_v36 = vld [vmem:[%s721_s3 + $0xc8] sm:$0xff]  ;;  %v123_v37 = vld [vmem:[%s721_s3 + $0x140] sm:$0xff] }
   0xa   :  { %450 = vmatprep.subr.bf16.mxu0 %v449_v21  ;;  %v124_v38 = vld [vmem:[%s721_s3 + $0x148] sm:$0xff]  ;;  %v455_v39 = vpack.c.bf16 %v90_v33, %v89_v32  ;;  %v457_v40 = vpack.c.bf16 %v108_v36, %v107_v35  ;;  %v91_v41 = vld [vmem:[%s721_s3 + $0x40] sm:$0xff]  ;;  %v109_v44 = vld [vmem:[%s721_s3 + $0xd0] sm:$0xff] }
   0xb   :  { %480 = vmatpush3.bf16.msra.mxu1 %v477_v17  ;;  %v92_v42 = vld [vmem:[%s721_s3 + $0x48] sm:$0xff]  ;;  %v489_v43 = vpack.c.bf16 %v124_v38, %v123_v37  ;;  %v110_v45 = vld [vmem:[%s721_s3 + $0xd8] sm:$0xff]  ;;  %v93_v46 = vld [vmem:[%s721_s3 + $0x50] sm:$0xff] }
   0xc   :  { %482 = vmatprep.subr.bf16.mxu1 %v481_v25  ;;  %v94_v47 = vld [vmem:[%s721_s3 + $0x58] sm:$0xff]  ;;  %v125_v48 = vld [vmem:[%s721_s3 + $0x150] sm:$0xff]  ;;  %v459_v50 = vpack.c.bf16 %v92_v42, %v91_v41  ;;  %v19_v51 = vld [vmem:[%s722_s0] sm:$0xff]  ;;  %v461_v54 = vpack.c.bf16 %v110_v45, %v109_v44 }
   0xd   :  { %452 = vmatpush3.bf16.msra.mxu0 %v451_v30  ;;  %v126_v49 = vld [vmem:[%s721_s3 + $0x158] sm:$0xff]  ;;  %v337_v52 = vld [vmem:[%s723_s1] ss:$0 sm:$0xff]  ;;  %v20_v56 = vld [vmem:[%s722_s0 + $0x8] sm:$0xff]  ;;  %v463_v4 = vpack.c.bf16 %v94_v47, %v93_v46 }
   0xe   :  { %454 = vmatprep.subr.bf16.mxu0 %v453_v31  ;;  %v338_v53 = vld [vmem:[%s724_s2] ss:$0 sm:$0xff]  ;;  %v30_v55 = vmul.f32 %v337_v52, %v19_v51  ;;  %v21_v57 = vld [vmem:[%s722_s0 + $0x10] sm:$0xff]  ;;  %v22_v58 = vld [vmem:[%s722_s0 + $0x18] sm:$0xff]  ;;  %v493_v59 = vpack.c.bf16 %v126_v49, %v125_v48  ;;  %v31_v62 = vmul.f32 %v337_v52, %v20_v56 }
   0xf   :  { %484 = vmatpush3.bf16.msra.mxu1 %v481_v25  ;;  %v111_v60 = vld [vmem:[%s721_s3 + $0xe0] sm:$0xff]  ;;  %v112_v61 = vld [vmem:[%s721_s3 + $0xe8] sm:$0xff]  ;;  %v32_v63 = vmul.f32 %v337_v52, %v21_v57  ;;  %v33_v0 = vmul.f32 %v337_v52, %v22_v58  ;;  %v113_v11 = vld [vmem:[%s721_s3 + $0xf0] sm:$0xff] }
  0x10   :  { %486 = vmatprep.subr.bf16.mxu1 %v485_v34  ;;  %v127_v1 = vld [vmem:[%s721_s3 + $0x160] sm:$0xff]  ;;  %v128_v2 = vld [vmem:[%s721_s3 + $0x168] sm:$0xff]  ;;  %v41_v3 = vadd.f32 %v338_v53, %v30_v55  ;;  %v42_v5 = vadd.f32 %v338_v53, %v31_v62  ;;  %v465_v6 = vpack.c.bf16 %v112_v61, %v111_v60  ;;  %v114_v12 = vld [vmem:[%s721_s3 + $0xf8] sm:$0xff] }
  0x11   :  { %456 = vmatpush3.bf16.msra.mxu0 %v455_v39  ;;  %v95_v7 = vld [vmem:[%s721_s3 + $0x60] sm:$0xff]  ;;  %v96_v8 = vld [vmem:[%s721_s3 + $0x68] sm:$0xff]  ;;  %v497_v10 = vpack.c.bf16 %v128_v2, %v127_v1  ;;  %v43_v14 = vadd.f32 %v338_v53, %v32_v63  ;;  %v44_v15 = vadd.f32 %v338_v53, %v33_v0  ;;  %v129_v16 = vld [vmem:[%s721_s3 + $0x170] sm:$0xff]  ;;  %v469_v21 = vpack.c.bf16 %v114_v12, %v113_v11 }
  0x12   :  { %458 = vmatprep.subr.bf16.mxu0 %v457_v40  ;;  %v45_v9 = vmax.f32 %v41_v3, 0.0  ;;  %v46_v13 = vmax.f32 %v42_v5, 0.0  ;;  %v130_v17 = vld [vmem:[%s721_s3 + $0x178] sm:$0xff]  ;;  %v467_v19 = vpack.c.bf16 %v96_v8, %v95_v7  ;;  %v97_v22 = vld [vmem:[%s721_s3 + $0x70] sm:$0xff] }
  0x13   :  { %488 = vmatpush3.bf16.msra.mxu1 %v485_v34  ;;  %v98_v23 = vld [vmem:[%s721_s3 + $0x78] sm:$0xff]  ;;  %v501_v24 = vpack.c.bf16 %v130_v17, %v129_v16  ;;  %v47_v26 = vmax.f32 %v43_v14, 0.0  ;;  %v48_v27 = vmax.f32 %v44_v15, 0.0 }
  0x14   :  { %490 = vmatprep.subr.bf16.mxu1 %v489_v43  ;;  %195 = vmatprep.mubr.f32.mxu0 %v45_v9  ;;  %v69_v18 = vrot.slane %v45_v9, 1  ;;  %v70_v20 = vrot.slane %v46_v13, 1  ;;  %v471_v28 = vpack.c.bf16 %v98_v23, %v97_v22  ;;  %v51_v29 = vrot.slane %v46_v13, 7 }
  0x15   :  { %460 = vmatpush3.bf16.msra.mxu0 %v459_v50  ;;  %v58_v30 = vrot.slane %v45_v9, 7  ;;  %v72_v31 = vrot.slane %v47_v26, 1  ;;  %v73_v32 = vrot.slane %v48_v27, 1  ;;  %v52_v37 = vrot.slane %v48_v27, 7 }
  0x16   :  { %462 = vmatprep.subr.bf16.mxu0 %v461_v54  ;;  %v71_v25 = vsel %vm68_vm0, %v69_v18, %v70_v20  ;;  %v81_v34 = vsel %vm68_vm0, %v70_v20, %v69_v18  ;;  %v60_v38 = vrot.slane %v47_v26, 7 }
  0x17   :  { %492 = vmatpush3.bf16.msra.mxu1 %v489_v43  ;;  %435 = vmatprep.mubr.f32.mxu1 %v71_v25  ;;  %v66_v33 = vsel %vm57_vm1, %v51_v29, %v58_v30  ;;  %v74_v35 = vsel %vm68_vm0, %v72_v31, %v73_v32  ;;  %v59_v36 = vsel %vm57_vm1, %v58_v30, %v51_v29 }
  0x18   :  { %494 = vmatprep.subr.bf16.mxu1 %v493_v59  ;;  %v82_v39 = vsel %vm68_vm0, %v73_v32, %v72_v31  ;;  %v67_v40 = vsel %vm57_vm1, %v52_v37, %v60_v38  ;;  %v61_v41 = vsel %vm57_vm1, %v60_v38, %v52_v37 }
  0x19   :  { %464 = vmatpush3.bf16.msra.mxu0 %v463_v4 }
  0x1a   :  { %466 = vmatprep.subr.bf16.mxu0 %v465_v6 }
  0x1b   :  { %496 = vmatpush3.bf16.msra.mxu1 %v493_v59 }
  0x1c   :  { %498 = vmatprep.subr.bf16.mxu1 %v497_v10 }
  0x1d   :  { %468 = vmatpush3.bf16.msra.mxu0 %v467_v19 }
  0x1e   :  { %470 = vmatprep.subr.bf16.mxu0 %v469_v21 }
  0x1f   :  { %500 = vmatpush3.bf16.msra.mxu1 %v497_v10 }
  0x20   :  { %502 = vmatprep.subr.bf16.mxu1 %v501_v24 }
  0x21   :  { %472 = vmatpush3.bf16.msra.mxu0 %v471_v28 }
  0x23   :  { %504 = vmatpush3.bf16.msra.mxu1 %v501_v24 }
  0x24   :  { %196 = vmatmul.mubr.f32.vlgmr.msra.gmra.mrb[0].mxu0 %v66_v33 }
  0x25   :  { %200 = vmatprep.mubr.f32.mxu0 %v46_v13 }
  0x26   :  { %436 = vmatmul.mubr.f32.vlgmr.msra.gmra.mrb[0].mxu1 %v81_v34 }
  0x27   :  { %438 = vmatprep.mubr.f32.mxu1 %v74_v35 }
  0x28   :  { %201 = vmatmul.mubr.f32.gmra.mrb[2].mxu0 %v59_v36 }
  0x29   :  { %205 = vmatprep.mubr.f32.mxu0 %v47_v26 }
  0x2a   :  { %439 = vmatmul.mubr.f32.gmra.mrb[2].mxu1 %v82_v39 }
  0x2c   :  { %206 = vmatmul.mubr.f32.gmra.mrb[4].mxu0 %v67_v40 }
  0x2d   :  { %210 = vmatprep.mubr.f32.mxu0 %v48_v27 }
  0x30   :  { %211 = vmatmul.mubr.f32.gmra.mrb[6].mxu0 %v61_v41 }
  0xf7   :  { %v371_v42 = vpop.f32.mrb[0].mxu0 }
  0xf8   :  { %v372_v43 = vpop.f32.mrb[1].mxu0 }
  0xf9   :  { %v437_v44 = vpop.f32.mrb[0].mxu1  ;;  %v373_v45 = vadd.f32 %v372_v43, %v371_v42 }
  0xfa   :  { %v282_v46 = vpop.f32.mrb[1].mxu1 }
  0xfb   :  { %v283_v47 = vadd.f32 %v373_v45, %v282_v46  ;;  %v374_v48 = vpop.f32.mrb[2].mxu0 }
  0xfc   :  { %v375_v49 = vpop.f32.mrb[3].mxu0 }
  0xfd   :  { %v440_v50 = vpop.f32.mrb[2].mxu1  ;;  %301 = vst [vmem:[%s725_s4] sm:$0xff] %v283_v47  ;;  %v376_v51 = vadd.f32 %v375_v49, %v374_v48  ;;  %v314_v56 = vmul.f32 %v283_v47, %v283_v47 }
  0xfe   :  { %v292_v52 = vpop.f32.mrb[3].mxu1 }
  0xff   :  { %v288_v53 = vadd.f32 %v437_v44, %v376_v51  ;;  %v377_v54 = vpop.f32.mrb[4].mxu0 }
 0x100   :  { %v378_v55 = vpop.f32.mrb[5].mxu0 }
 0x101   :  { %302 = vst [vmem:[%s725_s4 + $0x8] sm:$0xff] %v288_v53  ;;  %v315_v57 = vmul.f32 %v288_v53, %v288_v53  ;;  %v379_v58 = vadd.f32 %v378_v55, %v377_v54  ;;  %v305_v59 = vadd.f32 %v288_v53, %v283_v47 }
 0x103   :  { %v293_v60 = vadd.f32 %v379_v58, %v292_v52  ;;  %v318_v61 = vadd.f32 %v315_v57, %v314_v56  ;;  %v380_v62 = vpop.f32.mrb[6].mxu0 }
 0x104   :  { %v381_v63 = vpop.f32.mrb[7].mxu0 }
 0x105   :  { %303 = vst [vmem:[%s725_s4 + $0x10] sm:$0xff] %v293_v60  ;;  %v306_v0 = vadd.f32 %v305_v59, %v293_v60  ;;  %v316_v1 = vmul.f32 %v293_v60, %v293_v60  ;;  %v382_v2 = vadd.f32 %v381_v63, %v380_v62 }
 0x107   :  { %v319_v3 = vadd.f32 %v318_v61, %v316_v1  ;;  %v298_v4 = vadd.f32 %v440_v50, %v382_v2 }
 0x109   :  { %304 = vst [vmem:[%s725_s4 + $0x18] sm:$0xff] %v298_v4  ;;  %v307_v5 = vadd.f32 %v306_v0, %v298_v4  ;;  %v317_v6 = vmul.f32 %v298_v4, %v298_v4 }
 0x10b   :  { %v308_v7 = vrot.slane %v307_v5, 4  ;;  %v320_v8 = vadd.f32 %v319_v3, %v317_v6 }
 0x10d   :  { %v309_v9 = vadd.f32 %v308_v7, %v307_v5  ;;  %v321_v10 = vrot.slane %v320_v8, 4 }
 0x10f   :  { %v310_v11 = vrot.slane %v309_v9, 2  ;;  %v322_v12 = vadd.f32 %v321_v10, %v320_v8 }
 0x111   :  { %v311_v13 = vadd.f32 %v310_v11, %v309_v9  ;;  %v323_v14 = vrot.slane %v322_v12, 2 }
 0x113   :  { %v312_v15 = vrot.slane %v311_v13, 1  ;;  %v324_v16 = vadd.f32 %v323_v14, %v322_v12 }
 0x115   :  { %v325_v17 = vrot.slane %v324_v16, 1  ;;  %v313_v18 = vadd.f32 %v312_v15, %v311_v13 }
 0x117   :  { %v326_v19 = vadd.f32 %v325_v17, %v324_v16 }
 0x119   :  { %v327_v20 = vsel %vm57_vm1, %v313_v18, %v326_v19 }
 0x11a   :  { %328 = vst [vmem:[%s726_s5] sm:$0x3] %v327_v20 }

// kernel: tile.33
= control target key start
LH: loop header
LB: loop body
LE: loop exit
PB: predicated region body
PF: predicated region fallthrough
CT: control target
= control target key end

     0   :  { %s40_s0 = inlined_call_operand.vmem [shape: f32[8], index: 0, kind: input, shape index: {}]   ;;  %s41_s1 = inlined_call_operand.vmem [shape: f32[32,8], index: 1, kind: output, shape index: {}]  }
   0x1   :  { %v4_v0 = vld [vmem:[%s40_s0] ss:$0 sm:$0xff] }
   0x2   :  { %5 = vst [vmem:[%s41_s1] sm:$0xff] %v4_v0  ;;  %12 = vst [vmem:[%s41_s1 + $0x8] sm:$0xff] %v4_v0 }
   0x3   :  { %13 = vst [vmem:[%s41_s1 + $0x10] sm:$0xff] %v4_v0  ;;  %14 = vst [vmem:[%s41_s1 + $0x18] sm:$0xff] %v4_v0 }

// kernel: tile.34
= control target key start
LH: loop header
LB: loop body
LE: loop exit
PB: predicated region body
PF: predicated region fallthrough
CT: control target
= control target key end

     0   :  { %s7_s6 = smov 3  ;;  %s21_s9 = smov 3  ;;  %vm4_vm0 = vcmask 64512   ;;  %vm11_vm1 = vcmask 1048512   ;;  %vm18_vm2 = vcmask 982912   ;;  %vm25_vm3 = vcmask 917312   ;;  %s232_s0 = inlined_call_operand.vmem [shape: f32[32,8], index: 0, kind: input, shape index: {}]   ;;  %s233_s1 = inlined_call_operand.vmem [shape: f32[1,256], index: 1, kind: output, shape index: {}]  }
   0x1   :  { %v122_v0 = vld [vmem:[%s232_s0 + $0xf] ss:$16 sm:%s7_s6]   ;;  %s153_s10 = smov 120   ;;  %v124_v1 = vld [vmem:[%s232_s0 + $0xd] ss:$16 sm:%s21_s9]   ;;  %s14_s13 = smov 3 }
   0x2   :  { %9 = vrot.lane.b32.xlu0 %v122_v0, %s153_s10  ;;  %s154_s14 = smov 104   ;;  %v123_v2 = vld [vmem:[%s232_s0 + $0xe] ss:$16 sm:%s14_s13]   ;;  %s28_s17 = smov 3  ;;  %vm32_vm4 = vcmask 851712   ;;  %vm39_vm5 = vcmask 786112  }
   0x3   :  { %23 = vrot.lane.b32.xlu1 %v124_v1, %s154_s14  ;;  %v125_v3 = vld [vmem:[%s232_s0 + $0xc] ss:$16 sm:%s28_s17]   ;;  %s35_s20 = smov 3  ;;  %s42_s21 = smov 3  ;;  %vm46_vm6 = vcmask 720512   ;;  %vm53_vm7 = vcmask 654912  }
   0x4   :  { %s155_s22 = smov 112   ;;  %s156_s23 = smov 96   ;;  %v126_v4 = vld [vmem:[%s232_s0 + $0xb] ss:$16 sm:%s35_s20]   ;;  %v127_v5 = vld [vmem:[%s232_s0 + $0xa] ss:$16 sm:%s42_s21]  }
   0x5   :  { %s49_s28 = smov 3  ;;  %s56_s29 = smov 3  ;;  %vm60_vm8 = vcmask 589312   ;;  %vm67_vm9 = vcmask 523712   ;;  %vm74_vm10 = vcmask 458112   ;;  %vm81_vm11 = vcmask 392512  }
   0x6   :  { %16 = vrot.lane.b32.xlu0 %v123_v2, %s155_s22  ;;  %s157_s30 = smov 88   ;;  %s158_s2 = smov 80   ;;  %v128_v6 = vld [vmem:[%s232_s0 + $0x9] ss:$16 sm:%s49_s28]   ;;  %vm88_vm12 = vcmask 326912   ;;  %vm95_vm13 = vcmask 261312  }
   0x7   :  { %30 = vrot.lane.b32.xlu1 %v125_v3, %s156_s23  ;;  %v129_v7 = vld [vmem:[%s232_s0 + $0x8] ss:$16 sm:%s56_s29]   ;;  %s63_s7 = smov 3  ;;  %s70_s8 = smov 3  ;;  %vm102_vm14 = vcmask 195712   ;;  %vm109_vm15 = vcmask 130112  }
   0x8   :  { %s159_s9 = smov 72   ;;  %s160_s10 = smov 64   ;;  %v130_v8 = vld [vmem:[%s232_s0 + $0x7] ss:$16 sm:%s63_s7]   ;;  %v131_v9 = vld [vmem:[%s232_s0 + $0x6] ss:$16 sm:%s70_s8]  }
   0x9   :  { %s2_s13 = smov 3  ;;  %s77_s16 = smov 3 }
   0xa   :  { %37 = vrot.lane.b32.xlu0 %v126_v4, %s157_s30  ;;  %v3_v10 = vld [vmem:[%s232_s0] ss:$16 sm:%s2_s13]   ;;  %s84_s19 = smov 3  ;;  %s161_s20 = smov 56  }
   0xb   :  { %44 = vrot.lane.b32.xlu1 %v127_v5, %s158_s2  ;;  %5 = vst.msk [vmem:[#allocation0] ss:$8 sm:$0x3] %vm4_vm0, %v3_v10   ;;  %s162_s21 = smov 48   ;;  %v132_v11 = vld [vmem:[%s232_s0 + $0x5] ss:$16 sm:%s77_s16]  }
   0xc   :  { %v133_v12 = vld [vmem:[%s232_s0 + $0x4] ss:$16 sm:%s84_s19]   ;;  %s91_s26 = smov 3  ;;  %s98_s27 = smov 3 }
   0xd   :  { %s163_s28 = smov 40   ;;  %s164_s29 = smov 32   ;;  %v134_v13 = vld [vmem:[%s232_s0 + $0x3] ss:$16 sm:%s91_s26]   ;;  %v135_v14 = vld [vmem:[%s232_s0 + $0x2] ss:$16 sm:%s98_s27]  }
   0xe   :  { %51 = vrot.lane.b32.xlu0 %v128_v6, %s159_s9  ;;  %s105_s5 = smov 3  ;;  %s165_s6 = smov 24  }
   0xf   :  { %58 = vrot.lane.b32.xlu1 %v129_v7, %s160_s10  ;;  %s166_s7 = smov 16   ;;  %v136_v15 = vld [vmem:[%s232_s0 + $0x1] ss:$16 sm:%s105_s5]   ;;  %s167_s0 = smov 8  }
  0x12   :  { %65 = vrot.lane.b32.xlu0 %v130_v8, %s161_s20 }
  0x13   :  { %72 = vrot.lane.b32.xlu1 %v131_v9, %s162_s21 }
  0x16   :  { %79 = vrot.lane.b32.xlu0 %v132_v11, %s163_s28 }
  0x17   :  { %86 = vrot.lane.b32.xlu1 %v133_v12, %s164_s29 }
  0x1a   :  { %93 = vrot.lane.b32.xlu0 %v134_v13, %s165_s6 }
  0x1b   :  { %100 = vrot.lane.b32.xlu1 %v135_v14, %s166_s7 }
  0x1e   :  { %107 = vrot.lane.b32.xlu0 %v136_v15, %s167_s0 }
  0x74   :  { %v10_v16 = vpop.permute.xlu0 %9  }
  0x75   :  { %12 = vst.msk [vmem:[#allocation0] ss:$8 sm:$0x3] %vm11_vm1, %v10_v16   ;;  %v24_v17 = vpop.permute.xlu1 %23  }
  0x78   :  { %v17_v18 = vpop.permute.xlu0 %16  }
  0x79   :  { %19 = vst.msk [vmem:[#allocation0] ss:$8 sm:$0x3] %vm18_vm2, %v17_v18   ;;  %v31_v19 = vpop.permute.xlu1 %30  }
  0x7a   :  { %26 = vst.msk [vmem:[#allocation0] ss:$8 sm:$0x3] %vm25_vm3, %v24_v17  }
  0x7b   :  { %33 = vst.msk [vmem:[#allocation0] ss:$8 sm:$0x3] %vm32_vm4, %v31_v19  }
  0x7c   :  { %v38_v20 = vpop.permute.xlu0 %37  }
  0x7d   :  { %40 = vst.msk [vmem:[#allocation0] ss:$8 sm:$0x3] %vm39_vm5, %v38_v20   ;;  %v45_v21 = vpop.permute.xlu1 %44  }
  0x7e   :  { %47 = vst.msk [vmem:[#allocation0] ss:$8 sm:$0x3] %vm46_vm6, %v45_v21  }
  0x80   :  { %v52_v22 = vpop.permute.xlu0 %51  }
  0x81   :  { %54 = vst.msk [vmem:[#allocation0] ss:$8 sm:$0x3] %vm53_vm7, %v52_v22   ;;  %v59_v23 = vpop.permute.xlu1 %58  }
  0x82   :  { %61 = vst.msk [vmem:[#allocation0] ss:$8 sm:$0x3] %vm60_vm8, %v59_v23  }
  0x84   :  { %v66_v24 = vpop.permute.xlu0 %65  }
  0x85   :  { %68 = vst.msk [vmem:[#allocation0] ss:$8 sm:$0x3] %vm67_vm9, %v66_v24   ;;  %v73_v25 = vpop.permute.xlu1 %72  }
  0x86   :  { %75 = vst.msk [vmem:[#allocation0] ss:$8 sm:$0x3] %vm74_vm10, %v73_v25  }
  0x88   :  { %v80_v26 = vpop.permute.xlu0 %79  }
  0x89   :  { %82 = vst.msk [vmem:[#allocation0] ss:$8 sm:$0x3] %vm81_vm11, %v80_v26   ;;  %v87_v27 = vpop.permute.xlu1 %86  }
  0x8a   :  { %89 = vst.msk [vmem:[#allocation0] ss:$8 sm:$0x3] %vm88_vm12, %v87_v27  }
  0x8c   :  { %v94_v28 = vpop.permute.xlu0 %93  }
  0x8d   :  { %96 = vst.msk [vmem:[#allocation0] ss:$8 sm:$0x3] %vm95_vm13, %v94_v28   ;;  %v101_v29 = vpop.permute.xlu1 %100  }
  0x8e   :  { %103 = vst.msk [vmem:[#allocation0] ss:$8 sm:$0x3] %vm102_vm14, %v101_v29  }
  0x90   :  { %v108_v30 = vpop.permute.xlu0 %107  }
  0x91   :  { %110 = vst.msk [vmem:[#allocation0] ss:$8 sm:$0x3] %vm109_vm15, %v108_v30  }
  0x98   :  { %v114_v31 = vld [vmem:[#allocation0] sm:$0x1]  ;;  %v118_v32 = vld [vmem:[#allocation0 + $0x8] sm:$0x1] }
  0x99   :  { %116 = vst [vmem:[%s233_s1] sm:$0x1] %v114_v31  ;;  %137 = vst [vmem:[%s233_s1 + $0x1] sm:$0x1] %v118_v32 }

// kernel: cnn_block_forward.5
= control target key start
LH: loop header
LB: loop body
LE: loop exit
PB: predicated region body
PF: predicated region fallthrough
CT: control target
= control target key end

     0   :  { %v23_v0 = vlaneseq  ;;  %s253_s30 = smov 64   ;;  %vm160_vm0 = vcmask 523264   ;;  %s351_s3 = inlined_call_operand.vmem [shape: f32[128,128], index: 3, kind: input, shape index: {}]   ;;  %s352_s0 = inlined_call_operand.vmem [shape: f32[2,8,256], index: 0, kind: input, shape index: {}]   ;;  %s353_s1 = inlined_call_operand.vmem [shape: f32[1,256], index: 1, kind: input, shape index: {}]   ;;  %s354_s2 = inlined_call_operand.vmem [shape: f32[1,256], index: 2, kind: input, shape index: {}]   ;;  %s355_s4 = inlined_call_operand.vmem [shape: f32[2,8,64], index: 4, kind: output, shape index: {}]  }
   0x1   :  { %v59_v1 = vld [vmem:[%s351_s3] sm:$0xff]  ;;  %v60_v2 = vld [vmem:[%s351_s3 + $0x8] sm:$0xff]  ;;  %v61_v3 = vld [vmem:[%s351_s3 + $0x10] sm:$0xff] }
   0x2   :  { %v220_v4 = vpack.c.bf16 %v60_v2, %v59_v1  ;;  %v62_v5 = vld [vmem:[%s351_s3 + $0x18] sm:$0xff]  ;;  %v24_v6 = vshrl.u32 %v23_v0, 7  ;;  %v63_v8 = vld [vmem:[%s351_s3 + $0x20] sm:$0xff]  ;;  %v64_v9 = vld [vmem:[%s351_s3 + $0x28] sm:$0xff] }
   0x3   :  { %v224_v7 = vpack.c.bf16 %v62_v5, %v61_v3  ;;  %v228_v12 = vpack.c.bf16 %v64_v9, %v63_v8  ;;  %v65_v13 = vld [vmem:[%s351_s3 + $0x30] sm:$0xff]  ;;  %v66_v14 = vld [vmem:[%s351_s3 + $0x38] sm:$0xff]  ;;  %v17_v15 = vld [vmem:[%s352_s0] sm:$0xff] }
   0x4   :  { %221 = vmatprep.subr.bf16.mxu0 %v220_v4  ;;  %v25_v10 = vsub.s32 0, %v24_v6  ;;  %v29_v11 = vsub.s32 1, %v24_v6  ;;  %v18_v16 = vld [vmem:[%s352_s0 + $0x8] sm:$0xff]  ;;  %v21_v17 = vld [vmem:[%s353_s1] sm:$0x3]  ;;  %v232_v23 = vpack.c.bf16 %v66_v14, %v65_v13  ;;  %v69_v33 = vld [vmem:[%s351_s3 + $0x50] sm:$0xff] }
   0x5   :  { %223 = vmatpush3.bf16.msra.mxu0 %v220_v4  ;;  %v37_v18 = vld [vmem:[%s354_s2] sm:$0x3]  ;;  %v68_v27 = vld [vmem:[%s351_s3 + $0x48] sm:$0xff]  ;;  %v70_v34 = vld [vmem:[%s351_s3 + $0x58] sm:$0xff] }
   0x6   :  { %225 = vmatprep.subr.bf16.mxu0 %v224_v7  ;;  %v26_v19 = vrot.slane %v21_v17, %v25_v10  ;;  %v30_v20 = vrot.slane %v21_v17, %v29_v11  ;;  %v42_v21 = vrot.slane %v37_v18, %v25_v10  ;;  %v46_v22 = vrot.slane %v37_v18, %v29_v11  ;;  %v67_v26 = vld [vmem:[%s351_s3 + $0x40] sm:$0xff]  ;;  %v19_v36 = vld [vmem:[%s352_s0 + $0x10] sm:$0xff]  ;;  %v20_v37 = vld [vmem:[%s352_s0 + $0x18] sm:$0xff] }
   0x7   :  { %v236_v30 = vpack.c.bf16 %v68_v27, %v67_v26  ;;  %v240_v38 = vpack.c.bf16 %v70_v34, %v69_v33  ;;  %v71_v39 = vld [vmem:[%s351_s3 + $0x60] sm:$0xff]  ;;  %v72_v40 = vld [vmem:[%s351_s3 + $0x68] sm:$0xff]  ;;  %v73_v44 = vld [vmem:[%s351_s3 + $0x70] sm:$0xff] }
   0x8   :  { %v33_v24 = vmul.f32 %v26_v19, %v17_v15  ;;  %v34_v25 = vmul.f32 %v30_v20, %v18_v16  ;;  %v35_v41 = vmul.f32 %v26_v19, %v19_v36  ;;  %v36_v42 = vmul.f32 %v30_v20, %v20_v37  ;;  %v74_v45 = vld [vmem:[%s351_s3 + $0x78] sm:$0xff] }
   0x9   :  { %227 = vmatpush3.bf16.msra.mxu0 %v224_v7  ;;  %v244_v43 = vpack.c.bf16 %v72_v40, %v71_v39  ;;  %v248_v48 = vpack.c.bf16 %v74_v45, %v73_v44 }
   0xa   :  { %229 = vmatprep.subr.bf16.mxu0 %v228_v12  ;;  %v49_v28 = vadd.f32 %v42_v21, %v33_v24  ;;  %v50_v29 = vadd.f32 %v46_v22, %v34_v25  ;;  %v51_v46 = vadd.f32 %v42_v21, %v35_v41  ;;  %v52_v47 = vadd.f32 %v46_v22, %v36_v42 }
   0xc   :  { %v53_v31 = vmax.f32 %v49_v28, 0.0  ;;  %v54_v32 = vmax.f32 %v50_v29, 0.0  ;;  %v55_v49 = vmax.f32 %v51_v46, 0.0  ;;  %v56_v50 = vmax.f32 %v52_v47, 0.0 }
   0xd   :  { %231 = vmatpush3.bf16.msra.mxu0 %v228_v12 }
   0xe   :  { %233 = vmatprep.subr.bf16.mxu0 %v232_v23  ;;  %v57_v35 = vmax.f32 %v53_v31, %v54_v32  ;;  %v58_v51 = vmax.f32 %v55_v49, %v56_v50 }
  0x10   :  { %217 = vmatprep.mubr.f32.mxu0 %v57_v35 }
  0x11   :  { %235 = vmatpush3.bf16.msra.mxu0 %v232_v23 }
  0x12   :  { %237 = vmatprep.subr.bf16.mxu0 %v236_v30 }
  0x15   :  { %239 = vmatpush3.bf16.msra.mxu0 %v236_v30 }
  0x16   :  { %241 = vmatprep.subr.bf16.mxu0 %v240_v38 }
  0x19   :  { %243 = vmatpush3.bf16.msra.mxu0 %v240_v38 }
  0x1a   :  { %245 = vmatprep.subr.bf16.mxu0 %v244_v43 }
  0x1d   :  { %247 = vmatpush3.bf16.msra.mxu0 %v244_v43 }
  0x1e   :  { %249 = vmatprep.subr.bf16.mxu0 %v248_v48 }
  0x21   :  { %251 = vmatpush3.bf16.msra.mxu0 %v248_v48 }
  0x24   :  { %218 = vmatmul.mubr.f32.vlgmr.msra.gmra.mrb[0].mxu0 %v58_v51 }
  0xf7   :  { %v219_v52 = vpop.f32.mrb[0].mxu0 }
  0xf8   :  { %v141_v53 = vpop.f32.mrb[1].mxu0 }
  0xf9   :  { %152 = vrot.lane.b32.xlu0 %v141_v53, %s253_s30 }
  0xfd   :  { %154 = vrot.lane.b32.xlu0 %v219_v52, %s253_s30 }
 0x16b   :  { %v153_v54 = vpop.permute.xlu0 %152 }
 0x16c   :  { %v158_v55 = vmax.f32 %v141_v53, %v153_v54 }
 0x16e   :  { %161 = vst.msk [vmem:[%s355_s4] sm:$0xff] %vm160_vm0, %v158_v55 }
 0x16f   :  { %v155_v56 = vpop.permute.xlu0 %154 }
 0x170   :  { %v159_v57 = vmax.f32 %v219_v52, %v155_v56 }
 0x172   :  { %162 = vst.msk [vmem:[%s355_s4 + $0x8] sm:$0xff] %vm160_vm0, %v159_v57 }

</bundles_post_ra>
